<compile_context>
chip_gen: v7x
topology: tpu7x:2x2x1
jax: 0.10.0
libtpu: 0.0.40
codegen_flags: <defaults>
</compile_context>

<pallas_src>
import jax
import jax.numpy as jnp
from jax.experimental import pallas as pl
from jax.experimental.pallas import tpu as pltpu


def _scaled_conv1x1_kernel(x_ref, s_ref, w_ref, o_ref):
    # Fold the per-channel SE scale into the weight tile (small VPU op, hidden under
    # the next weight tile's DMA), then 1x1 conv as one MXU matmul:
    #   (cout_blk, Cin) @ (Cin, HW) -> (cout_blk, HW), bf16 operands, f32 accumulate.
    w_scaled = (w_ref[...] * s_ref[...]).astype(jnp.bfloat16)   # (cout_blk, Cin)
    x_bf16 = x_ref[...].astype(jnp.bfloat16)                    # (Cin, HW)
    o_ref[...] = jnp.dot(
        w_scaled, x_bf16, preferred_element_type=jnp.float32
    ).astype(o_ref.dtype)


def _pick_cout_block(cout):
    """Uniform (device-agnostic) Cout blocking: aim for ~4-8 grid steps with a
    sublane-aligned (multiple-of-8) tile; fall back to a single block otherwise."""
    for blk in (56, 64, 48, 32, 40, 24, 16, 8):
        if cout % blk == 0:
            return blk
    return cout


def mul_conv1x1(x_nchw, scale_nc11, weight_oihw, *, cout_blk=None):
    """x_nchw: (N, Cin, H, W); scale_nc11: (1, Cin, 1, 1); weight_oihw: (Cout, Cin, 1, 1)."""
    N, Cin, H, W = x_nchw.shape
    Cout = weight_oihw.shape[0]
    HW = H * W

    # Free (layout-preserving) reshapes - no transposes, no extra HBM round-trips.
    x = x_nchw.reshape(N, Cin, HW)        # (N, Cin, HW)
    s = scale_nc11.reshape(1, Cin)        # (1, Cin)
    w = weight_oihw.reshape(Cout, Cin)    # (Cout, Cin)  (PyTorch OIHW with k=1)

    if cout_blk is None:
        cout_blk = _pick_cout_block(Cout)
    n_cout_blocks = Cout // cout_blk

    itemsize = x.dtype.itemsize
    cost = pl.CostEstimate(
        flops=2 * N * Cout * Cin * HW,
        transcendentals=0,
        bytes_accessed=(x.size + s.size + w.size + N * Cout * HW) * itemsize,
    )

    out = pl.pallas_call(
        _scaled_conv1x1_kernel,
        out_shape=jax.ShapeDtypeStruct((N, Cout, HW), x.dtype),
        grid=(N, n_cout_blocks),
        in_specs=[
            # Activations: block index constant along the Cout axis -> DMA'd once
            # per core; only weight/output tiles change per step (pipeline fodder).
            pl.BlockSpec((None, Cin, HW), lambda n, j: (n, 0, 0)),
            pl.BlockSpec((1, Cin), lambda n, j: (0, 0)),            # per-channel scale
            pl.BlockSpec((cout_blk, Cin), lambda n, j: (j, 0)),     # conv weight tile
        ],
        out_specs=pl.BlockSpec((None, cout_blk, HW), lambda n, j: (n, j, 0)),
        compiler_params=pltpu.CompilerParams(
            dimension_semantics=("parallel", "parallel"),
        ),
        cost_estimate=cost,
    )(x, s, w)

    # Free reshape back to NCHW.
    return out.reshape(N, Cout, H, W)


if __name__ == "__main__":
    key = jax.random.PRNGKey(0)
    k1, k2, k3 = jax.random.split(key, 3)

    # Shapes from the original module: x506 (1,1344,14,14), x511 (1,1344,1,1),
    # Conv2d(1344, 224, 1, bias=False) weight (224,1344,1,1).
    N, Cin, H, W, Cout = 1, 1344, 14, 14, 224

    x506 = jax.random.normal(k1, (N, Cin, H, W), dtype=jnp.float32)
    x511 = jax.random.normal(k2, (1, Cin, 1, 1), dtype=jnp.float32)
    conv_w = jax.random.normal(k3, (Cout, Cin, 1, 1), dtype=jnp.float32) * 0.02

    out = mul_conv1x1(x506, x511, conv_w)
    jax.block_until_ready(out)
    assert out.shape == (N, Cout, H, W)

    # 1) Tight check against a reference using the same bf16-operand / f32-accumulate
    #    matmul semantics as the kernel (verifies the kernel math exactly).
    w_scaled_bf = (conv_w.reshape(Cout, Cin) * x511.reshape(1, Cin)).astype(jnp.bfloat16)
    x_bf = x506.reshape(N, Cin, H * W).astype(jnp.bfloat16)
    ref_bf16 = jnp.einsum(
        "oc,nch->noh",
        w_scaled_bf.astype(jnp.float32),
        x_bf.astype(jnp.float32),
    ).reshape(N, Cout, H, W)
    assert jnp.allclose(out, ref_bf16, atol=1e-3, rtol=1e-3)

    # 2) Looser check against the exact f32 PyTorch-equivalent math (tolerance covers
    #    the bf16 input rounding of the default-precision TPU matmul; K=1344, f32 acc).
    x512 = x506 * x511
    ref_f32 = jnp.einsum("nchw,oc->nohw", x512, conv_w.reshape(Cout, Cin))
    assert jnp.allclose(out, ref_f32, atol=5e-2, rtol=5e-2)

    print("KERNEL_OK")
</pallas_src>

<mosaic_0001>
module attributes {stable_mosaic.version = 11 : i64} {
  func.func @_scaled_conv1x1_kernel(%arg0: i32, %arg1: i32, %arg2: memref<1x1344x196xf32, #tpu.memory_space<vmem>>, %arg3: memref<1x1344xf32, #tpu.memory_space<vmem>>, %arg4: memref<56x1344xf32, #tpu.memory_space<vmem>>, %arg5: memref<1x56x196xf32, #tpu.memory_space<vmem>>) attributes {dimension_semantics = [#tpu.dimension_semantics<parallel>, #tpu.dimension_semantics<parallel>], iteration_bounds = array<i64: 1, 4>, scalar_prefetch = 0 : i64, scratch_operands = 0 : i64, tpu.core_type = #tpu.core_type<tc>, window_params = [{transform_indices = @transform_0, window_bounds = array<i64: 1, 1344, 196>}, {pipeline_mode = #tpu.pipeline_mode<synchronous>, transform_indices = @transform_1, window_bounds = array<i64: 1, 1344>}, {transform_indices = @transform_2, window_bounds = array<i64: 56, 1344>}, {transform_indices = @transform_3, window_bounds = array<i64: 1, 56, 196>}]} {
    %c0 = arith.constant 0 : index
    %c0_0 = arith.constant 0 : index
    %0 = vector.load %arg4[%c0, %c0_0] : memref<56x1344xf32, #tpu.memory_space<vmem>>, vector<56x1344xf32>
    %c0_1 = arith.constant 0 : index
    %c0_2 = arith.constant 0 : index
    %1 = vector.load %arg3[%c0_1, %c0_2] : memref<1x1344xf32, #tpu.memory_space<vmem>>, vector<1x1344xf32>
    %2 = vector.broadcast %1 : vector<1x1344xf32> to vector<56x1344xf32>
    %3 = arith.mulf %0, %2 : vector<56x1344xf32>
    %4 = arith.truncf %3 : vector<56x1344xf32> to vector<56x1344xbf16>
    %c0_3 = arith.constant 0 : index
    %c0_4 = arith.constant 0 : index
    %c0_5 = arith.constant 0 : index
    %5 = vector.load %arg2[%c0_3, %c0_4, %c0_5] : memref<1x1344x196xf32, #tpu.memory_space<vmem>>, vector<1x1344x196xf32>
    %6 = vector.shape_cast %5 : vector<1x1344x196xf32> to vector<1344x196xf32>
    %7 = arith.truncf %6 : vector<1344x196xf32> to vector<1344x196xbf16>
    %cst = arith.constant dense<0.000000e+00> : vector<56x196xf32>
    %8 = tpu.matmul %4, %7, %cst {dimension_numbers = #tpu.dot_dimension_numbers<[1], [0], [0], [1], [0, 0, 1, 1], [], []>} : vector<56x1344xbf16>, vector<1344x196xbf16>, vector<56x196xf32> -> vector<56x196xf32>
    %c0_6 = arith.constant 0 : index
    %c0_7 = arith.constant 0 : index
    %c0_8 = arith.constant 0 : index
    %9 = vector.load %arg5[%c0_6, %c0_7, %c0_8] : memref<1x56x196xf32, #tpu.memory_space<vmem>>, vector<1x56x196xf32>
    %10 = vector.shape_cast %9 : vector<1x56x196xf32> to vector<56x196xf32>
    %11 = vector.shape_cast %8 : vector<56x196xf32> to vector<1x56x196xf32>
    tpu.vector_store %arg5[%c0_6, %c0_7, %c0_8], %11 {strides = array<i32>} : memref<1x56x196xf32, #tpu.memory_space<vmem>>, vector<1x56x196xf32>,
    return
  }
  func.func @transform_0(%arg0: i32, %arg1: i32) -> (i32, i32, i32) {
    %c0_i32 = arith.constant 0 : i32
    %c0_i32_0 = arith.constant 0 : i32
    %c0_i32_1 = arith.constant 0 : i32
    return %arg0, %c0_i32, %c0_i32_0 : i32, i32, i32
  }
  func.func @transform_1(%arg0: i32, %arg1: i32) -> (i32, i32) {
    %c0_i32 = arith.constant 0 : i32
    %c0_i32_0 = arith.constant 0 : i32
    %c0_i32_1 = arith.constant 0 : i32
    return %c0_i32, %c0_i32_0 : i32, i32
  }
  func.func @transform_2(%arg0: i32, %arg1: i32) -> (i32, i32) {
    %c0_i32 = arith.constant 0 : i32
    %c0_i32_0 = arith.constant 0 : i32
    return %arg1, %c0_i32 : i32, i32
  }
  func.func @transform_3(%arg0: i32, %arg1: i32) -> (i32, i32, i32) {
    %c0_i32 = arith.constant 0 : i32
    %c0_i32_0 = arith.constant 0 : i32
    return %arg0, %arg1, %c0_i32 : i32, i32, i32
  }
}

</mosaic_0001>

<bundles_post_ra>
// kernel: tpu_custom_call.1
= control target key start
LH: loop header
LB: loop body
LE: loop exit
PB: predicated region body
PF: predicated region fallthrough
CT: control target
= control target key end

     0   :  { %s1704_s12 = smov 0   ;;  %s1706_s13 = smov 0   ;;  %s3017_s0 = inlined_call_operand.vmem [shape: f32[1,1344,196], index: 0, kind: input, shape index: {}]   ;;  %s3018_s1 = inlined_call_operand.vmem [shape: f32[1,1344], index: 1, kind: input, shape index: {}]   ;;  %s3019_s2 = inlined_call_operand.vmem [shape: f32[224,1344], index: 2, kind: input, shape index: {}]   ;;  %s3020_s3 = inlined_call_operand.vmem [shape: f32[1,224,196], index: 3, kind: output, shape index: {}]  }
   0x1   :  { %s1708_s14 = smov 0  }
   0x2 LB: > { %s22_s15 = sadd.s32 1, %s1677_s13  ;;  %p1544_p0 = scmp.ge.s32.totalorder %s1681_s14, 1  ;;  %s1681_s14 = sphi %s1708_s14, %s13_s14   ;;  %s1677_s13 = sphi %s1706_s13, %s3023_s13   ;;  %s1673_s12 = sphi %s1704_s12, %s3022_s12  }
   0x3   : > { %p23_p1 = scmp.ge.s32.totalorder %s22_s15, 4  ;;  %p163_p2 = scmp.lt.s32.totalorder %s1681_s14, 5 }
   0x5   : > { %s3025_s15 = smov (%p23_p1, %s22_s15), 0  ;;  %p164_p3 = pnand %p1544_p0, %p163_p2 }
   0x6   : > { %v480_v0 = vld [vmem:[%s3017_s0 + $0x8] sm:$0xff] (!%p164_p3)  ;;  %v482_v1 = vld [vmem:[%s3017_s0 + $0x18] sm:$0xff] (!%p164_p3)  ;;  %v479_v5 = vld [vmem:[%s3017_s0] sm:$0xff] (!%p164_p3)  ;;  %s203_s21 = smul.u32 (!%p164_p3), 7, %s1673_s12  ;;  %vm983_vm0 = vcmask (!%p164_p3), 523264   ;;  %vm1423_vm1 = vcmask (!%p164_p3), 556032  }
   0x7   : > { %167 = sbr.rel (%p164_p3) target bundleno = 441 (0x1b9), region = 32  ;;  %v672_v2 = vld [vmem:[%s3017_s0 + $0x608] sm:$0xff] (!%p164_p3)  ;;  %v816_v3 = vpack.c.bf16 (!%p164_p3), %v482_v1, %v480_v0  ;;  %v674_v4 = vld [vmem:[%s3017_s0 + $0x618] sm:$0xff] (!%p164_p3)  ;;  %v481_v6 = vld [vmem:[%s3017_s0 + $0x10] sm:$0xff] (!%p164_p3) }
   0x8   : > { %v912_v7 = vpack.c.bf16 (!%p164_p3), %v674_v4, %v672_v2  ;;  %v815_v8 = vpack.c.bf16 (!%p164_p3), %v481_v6, %v479_v5  ;;  %v671_v9 = vld [vmem:[%s3017_s0 + $0x600] sm:$0xff] (!%p164_p3)  ;;  %v673_v10 = vld [vmem:[%s3017_s0 + $0x610] sm:$0xff] (!%p164_p3)  ;;  %v484_v11 = vld [vmem:[%s3017_s0 + $0x28] sm:$0xff] (!%p164_p3)  ;;  %p1931_p4 = scmp.lt.s32.totalorder (!%p164_p3), %s203_s21, 27 }
   0x9   : > { %996 = vmatprep.subr.bf16.mxu1 (!%p164_p3), %v816_v3  ;;  %v911_v12 = vpack.c.bf16 (!%p164_p3), %v673_v10, %v671_v9  ;;  %v486_v13 = vld [vmem:[%s3017_s0 + $0x38] sm:$0xff] (!%p164_p3)  ;;  %v676_v14 = vld [vmem:[%s3017_s0 + $0x628] sm:$0xff] (!%p164_p3)  ;;  %v483_v18 = vld [vmem:[%s3017_s0 + $0x20] sm:$0xff] (!%p164_p3) }
   0xa   : > { %v678_v15 = vld [vmem:[%s3017_s0 + $0x638] sm:$0xff] (!%p164_p3)  ;;  %1209 = vmatprep.subr.bf16.mxu0 (!%p164_p3), %v912_v7  ;;  %997 = vmatpush1.bf16.msra.mxu1 (!%p164_p3), %v815_v8  ;;  %v818_v16 = vpack.c.bf16 (!%p164_p3), %v486_v13, %v484_v11  ;;  %v485_v19 = vld [vmem:[%s3017_s0 + $0x30] sm:$0xff] (!%p164_p3)  ;;  %v675_v20 = vld [vmem:[%s3017_s0 + $0x620] sm:$0xff] (!%p164_p3) }
   0xb   : > { %v914_v17 = vpack.c.bf16 (!%p164_p3), %v678_v15, %v676_v14  ;;  %1210 = vmatpush1.bf16.msra.mxu0 (!%p164_p3), %v911_v12  ;;  %v817_v21 = vpack.c.bf16 (!%p164_p3), %v485_v19, %v483_v18  ;;  %v677_v22 = vld [vmem:[%s3017_s0 + $0x630] sm:$0xff] (!%p164_p3)  ;;  %v488_v23 = vld [vmem:[%s3017_s0 + $0x48] sm:$0xff] (!%p164_p3)  ;;  %v490_v24 = vld [vmem:[%s3017_s0 + $0x58] sm:$0xff] (!%p164_p3) }
   0xc   : > { %998 = vmatprep.subr.bf16.mxu1 (!%p164_p3), %v818_v16  ;;  %v913_v25 = vpack.c.bf16 (!%p164_p3), %v677_v22, %v675_v20  ;;  %v820_v26 = vpack.c.bf16 (!%p164_p3), %v490_v24, %v488_v23  ;;  %v680_v27 = vld [vmem:[%s3017_s0 + $0x648] sm:$0xff] (!%p164_p3)  ;;  %v682_v28 = vld [vmem:[%s3017_s0 + $0x658] sm:$0xff] (!%p164_p3)  ;;  %v487_v29 = vld [vmem:[%s3017_s0 + $0x40] sm:$0xff] (!%p164_p3) }
   0xd   : > { %1211 = vmatprep.subr.bf16.mxu0 (!%p164_p3), %v914_v17  ;;  %v916_v30 = vpack.c.bf16 (!%p164_p3), %v682_v28, %v680_v27  ;;  %v489_v31 = vld [vmem:[%s3017_s0 + $0x50] sm:$0xff] (!%p164_p3)  ;;  %v679_v32 = vld [vmem:[%s3017_s0 + $0x640] sm:$0xff] (!%p164_p3)  ;;  %v492_v35 = vld [vmem:[%s3017_s0 + $0x68] sm:$0xff] (!%p164_p3) }
   0xe   : > { %v681_v33 = vld [vmem:[%s3017_s0 + $0x650] sm:$0xff]  ;;  %999 = vmatpush1.bf16.msra.mxu1 %v817_v21  ;;  %v819_v34 = vpack.c.bf16 %v489_v31, %v487_v29  ;;  %v494_v36 = vld [vmem:[%s3017_s0 + $0x78] sm:$0xff]  ;;  %v684_v37 = vld [vmem:[%s3017_s0 + $0x668] sm:$0xff]  ;;  %s3027_s21 = smov (!%p1931_p4, %s203_s21), 27 }
   0xf   : > { %1212 = vmatpush1.bf16.msra.mxu0 %v913_v25  ;;  %1000 = vmatprep.subr.bf16.mxu1 %v820_v26  ;;  %v915_v38 = vpack.c.bf16 %v681_v33, %v679_v32  ;;  %v822_v39 = vpack.c.bf16 %v494_v36, %v492_v35  ;;  %v686_v40 = vld [vmem:[%s3017_s0 + $0x678] sm:$0xff]  ;;  %v491_v41 = vld [vmem:[%s3017_s0 + $0x60] sm:$0xff]  ;;  %v493_v42 = vld [vmem:[%s3017_s0 + $0x70] sm:$0xff]  ;;  %s1633_s26 = smul.u32 88, %s3027_s21 }
  0x10   : > { %1213 = vmatprep.subr.bf16.mxu0 %v916_v30  ;;  %v918_v43 = vpack.c.bf16 %v686_v40, %v684_v37  ;;  %v683_v44 = vld [vmem:[%s3017_s0 + $0x660] sm:$0xff]  ;;  %v685_v45 = vld [vmem:[%s3017_s0 + $0x670] sm:$0xff]  ;;  %v496_v46 = vld [vmem:[%s3017_s0 + $0x88] sm:$0xff]  ;;  %v821_v50 = vpack.c.bf16 %v493_v42, %v491_v41 }
  0x11   : > { %v498_v47 = vld [vmem:[%s3017_s0 + $0x98] sm:$0xff]  ;;  %v688_v48 = vld [vmem:[%s3017_s0 + $0x688] sm:$0xff]  ;;  %v917_v51 = vpack.c.bf16 %v685_v45, %v683_v44  ;;  %v495_v53 = vld [vmem:[%s3017_s0 + $0x80] sm:$0xff]  ;;  %s2025_s27 = scalar_lea.vmem %s3019_s2, %s1633_s26 }
  0x12   : > { %v690_v49 = vld [vmem:[%s3017_s0 + $0x698] sm:$0xff]  ;;  %1001 = vmatpush1.bf16.msra.mxu1 %v819_v34  ;;  %v824_v52 = vpack.c.bf16 %v498_v47, %v496_v46  ;;  %v497_v54 = vld [vmem:[%s3017_s0 + $0x90] sm:$0xff]  ;;  %v687_v55 = vld [vmem:[%s3017_s0 + $0x680] sm:$0xff]  ;;  %v303_v47 = vlaneseq }
  0x13   : > { %1214 = vmatpush1.bf16.msra.mxu0 %v915_v38  ;;  %1002 = vmatprep.subr.bf16.mxu1 %v822_v39  ;;  %v920_v56 = vpack.c.bf16 %v690_v49, %v688_v48  ;;  %v689_v57 = vld [vmem:[%s3017_s0 + $0x690] sm:$0xff]  ;;  %v500_v58 = vld [vmem:[%s3017_s0 + $0xa8] sm:$0xff]  ;;  %v502_v59 = vld [vmem:[%s3017_s0 + $0xb8] sm:$0xff]  ;;  %v823_v62 = vpack.c.bf16 %v497_v54, %v495_v53 }
  0x14   : > { %1215 = vmatprep.subr.bf16.mxu0 %v918_v43  ;;  %v692_v60 = vld [vmem:[%s3017_s0 + $0x6a8] sm:$0xff]  ;;  %v694_v61 = vld [vmem:[%s3017_s0 + $0x6b8] sm:$0xff]  ;;  %v919_v63 = vpack.c.bf16 %v689_v57, %v687_v55  ;;  %v826_v0 = vpack.c.bf16 %v502_v59, %v500_v58  ;;  %v499_v1 = vld [vmem:[%s3017_s0 + $0xa0] sm:$0xff] }
  0x15   : > { %v501_v2 = vld [vmem:[%s3017_s0 + $0xb0] sm:$0xff]  ;;  %v691_v3 = vld [vmem:[%s3017_s0 + $0x6a0] sm:$0xff]  ;;  %v922_v4 = vpack.c.bf16 %v694_v61, %v692_v60  ;;  %v504_v6 = vld [vmem:[%s3017_s0 + $0xc8] sm:$0xff]  ;;  %v1990_v60 = vshrl.u32 %v303_v47, 7 }
  0x16   : > { %1003 = vmatpush1.bf16.msra.mxu1 %v821_v50  ;;  %v693_v5 = vld [vmem:[%s3017_s0 + $0x6b0] sm:$0xff]  ;;  %v506_v7 = vld [vmem:[%s3017_s0 + $0xd8] sm:$0xff]  ;;  %v696_v8 = vld [vmem:[%s3017_s0 + $0x6c8] sm:$0xff]  ;;  %v825_v10 = vpack.c.bf16 %v501_v2, %v499_v1 }
  0x17   : > { %1216 = vmatpush1.bf16.msra.mxu0 %v917_v51  ;;  %1004 = vmatprep.subr.bf16.mxu1 %v824_v52  ;;  %v698_v9 = vld [vmem:[%s3017_s0 + $0x6d8] sm:$0xff]  ;;  %v921_v11 = vpack.c.bf16 %v693_v5, %v691_v3  ;;  %v828_v12 = vpack.c.bf16 %v506_v7, %v504_v6  ;;  %v503_v13 = vld [vmem:[%s3017_s0 + $0xc0] sm:$0xff]  ;;  %v505_v14 = vld [vmem:[%s3017_s0 + $0xd0] sm:$0xff] }
  0x18   : > { %1217 = vmatprep.subr.bf16.mxu0 %v920_v56  ;;  %v695_v15 = vld [vmem:[%s3017_s0 + $0x6c0] sm:$0xff]  ;;  %v924_v16 = vpack.c.bf16 %v698_v9, %v696_v8  ;;  %v697_v17 = vld [vmem:[%s3017_s0 + $0x6d0] sm:$0xff]  ;;  %v508_v18 = vld [vmem:[%s3017_s0 + $0xe8] sm:$0xff]  ;;  %v827_v22 = vpack.c.bf16 %v505_v14, %v503_v13 }
  0x19   : > { %v510_v19 = vld [vmem:[%s3017_s0 + $0xf8] sm:$0xff]  ;;  %v700_v20 = vld [vmem:[%s3017_s0 + $0x6e8] sm:$0xff]  ;;  %v923_v23 = vpack.c.bf16 %v697_v17, %v695_v15  ;;  %v507_v25 = vld [vmem:[%s3017_s0 + $0xe0] sm:$0xff] }
  0x1a   : > { %1005 = vmatpush1.bf16.msra.mxu1 %v823_v62  ;;  %v702_v21 = vld [vmem:[%s3017_s0 + $0x6f8] sm:$0xff]  ;;  %v830_v24 = vpack.c.bf16 %v510_v19, %v508_v18  ;;  %v509_v26 = vld [vmem:[%s3017_s0 + $0xf0] sm:$0xff]  ;;  %v699_v27 = vld [vmem:[%s3017_s0 + $0x6e0] sm:$0xff]  ;;  %v313_v18 = vsub.s32 2, %v1990_v60 }
  0x1b   : > { %1218 = vmatpush1.bf16.msra.mxu0 %v919_v63  ;;  %1006 = vmatprep.subr.bf16.mxu1 %v826_v0  ;;  %v926_v28 = vpack.c.bf16 %v702_v21, %v700_v20  ;;  %v701_v29 = vld [vmem:[%s3017_s0 + $0x6f0] sm:$0xff]  ;;  %v512_v30 = vld [vmem:[%s3017_s0 + $0x108] sm:$0xff]  ;;  %v514_v31 = vld [vmem:[%s3017_s0 + $0x118] sm:$0xff]  ;;  %v829_v34 = vpack.c.bf16 %v509_v26, %v507_v25 }
  0x1c   : > { %1219 = vmatprep.subr.bf16.mxu0 %v922_v4  ;;  %v704_v32 = vld [vmem:[%s3017_s0 + $0x708] sm:$0xff]  ;;  %v706_v33 = vld [vmem:[%s3017_s0 + $0x718] sm:$0xff]  ;;  %v925_v35 = vpack.c.bf16 %v701_v29, %v699_v27  ;;  %v832_v36 = vpack.c.bf16 %v514_v31, %v512_v30  ;;  %v511_v37 = vld [vmem:[%s3017_s0 + $0x100] sm:$0xff] }
  0x1d   : > { %v513_v38 = vld [vmem:[%s3017_s0 + $0x110] sm:$0xff]  ;;  %v703_v39 = vld [vmem:[%s3017_s0 + $0x700] sm:$0xff]  ;;  %v928_v40 = vpack.c.bf16 %v706_v33, %v704_v32  ;;  %v516_v42 = vld [vmem:[%s3017_s0 + $0x128] sm:$0xff] }
  0x1e   : > { %1007 = vmatpush1.bf16.msra.mxu1 %v825_v10  ;;  %v705_v41 = vld [vmem:[%s3017_s0 + $0x710] sm:$0xff]  ;;  %v518_v43 = vld [vmem:[%s3017_s0 + $0x138] sm:$0xff]  ;;  %v708_v44 = vld [vmem:[%s3017_s0 + $0x728] sm:$0xff]  ;;  %v831_v46 = vpack.c.bf16 %v513_v38, %v511_v37 }
  0x1f   : > { %1220 = vmatpush1.bf16.msra.mxu0 %v921_v11  ;;  %1008 = vmatprep.subr.bf16.mxu1 %v828_v12  ;;  %v710_v45 = vld [vmem:[%s3017_s0 + $0x738] sm:$0xff]  ;;  %v927_v48 = vpack.c.bf16 %v705_v41, %v703_v39  ;;  %v834_v49 = vpack.c.bf16 %v518_v43, %v516_v42  ;;  %v515_v50 = vld [vmem:[%s3017_s0 + $0x120] sm:$0xff]  ;;  %v517_v51 = vld [vmem:[%s3017_s0 + $0x130] sm:$0xff]  ;;  %v309_v11 = vsub.s32 1, %v1990_v60  ;;  %v333_v12 = vsub.s32 7, %v1990_v60 }
  0x20   : > { %1221 = vmatprep.subr.bf16.mxu0 %v924_v16  ;;  %v707_v52 = vld [vmem:[%s3017_s0 + $0x720] sm:$0xff]  ;;  %v930_v53 = vpack.c.bf16 %v710_v45, %v708_v44  ;;  %v709_v54 = vld [vmem:[%s3017_s0 + $0x730] sm:$0xff]  ;;  %v520_v55 = vld [vmem:[%s3017_s0 + $0x148] sm:$0xff]  ;;  %v833_v59 = vpack.c.bf16 %v517_v51, %v515_v50 }
  0x21   : > { %v522_v56 = vld [vmem:[%s3017_s0 + $0x158] sm:$0xff]  ;;  %v712_v57 = vld [vmem:[%s3017_s0 + $0x748] sm:$0xff]  ;;  %v929_v61 = vpack.c.bf16 %v709_v54, %v707_v52  ;;  %v519_v63 = vld [vmem:[%s3017_s0 + $0x140] sm:$0xff] }
  0x22   : > { %1009 = vmatpush1.bf16.msra.mxu1 %v827_v22  ;;  %v714_v58 = vld [vmem:[%s3017_s0 + $0x758] sm:$0xff]  ;;  %v836_v62 = vpack.c.bf16 %v522_v56, %v520_v55  ;;  %v521_v0 = vld [vmem:[%s3017_s0 + $0x150] sm:$0xff]  ;;  %v711_v1 = vld [vmem:[%s3017_s0 + $0x740] sm:$0xff] }
  0x23   : > { %1222 = vmatpush1.bf16.msra.mxu0 %v923_v23  ;;  %1010 = vmatprep.subr.bf16.mxu1 %v830_v24  ;;  %v932_v2 = vpack.c.bf16 %v714_v58, %v712_v57  ;;  %v713_v3 = vld [vmem:[%s3017_s0 + $0x750] sm:$0xff]  ;;  %v524_v4 = vld [vmem:[%s3017_s0 + $0x168] sm:$0xff]  ;;  %v526_v5 = vld [vmem:[%s3017_s0 + $0x178] sm:$0xff]  ;;  %v835_v8 = vpack.c.bf16 %v521_v0, %v519_v63  ;;  %v329_v0 = vsub.s32 6, %v1990_v60 }
  0x24   : > { %1223 = vmatprep.subr.bf16.mxu0 %v926_v28  ;;  %v716_v6 = vld [vmem:[%s3017_s0 + $0x768] sm:$0xff]  ;;  %v718_v7 = vld [vmem:[%s3017_s0 + $0x778] sm:$0xff]  ;;  %v523_v9 = vld [vmem:[%s3017_s0 + $0x160] sm:$0xff]  ;;  %v931_v13 = vpack.c.bf16 %v713_v3, %v711_v1  ;;  %v838_v14 = vpack.c.bf16 %v526_v5, %v524_v4 }
  0x25   : > { %v525_v10 = vld [vmem:[%s3017_s0 + $0x170] sm:$0xff]  ;;  %v715_v15 = vld [vmem:[%s3017_s0 + $0x760] sm:$0xff]  ;;  %v528_v17 = vld [vmem:[%s3017_s0 + $0x188] sm:$0xff]  ;;  %v934_v19 = vpack.c.bf16 %v718_v7, %v716_v6 }
  0x26   : > { %1011 = vmatpush1.bf16.msra.mxu1 %v829_v34  ;;  %v717_v16 = vld [vmem:[%s3017_s0 + $0x770] sm:$0xff]  ;;  %v530_v20 = vld [vmem:[%s3017_s0 + $0x198] sm:$0xff]  ;;  %v720_v21 = vld [vmem:[%s3017_s0 + $0x788] sm:$0xff]  ;;  %v837_v26 = vpack.c.bf16 %v525_v10, %v523_v9 }
  0x27   : > { %1224 = vmatpush1.bf16.msra.mxu0 %v925_v35  ;;  %1012 = vmatprep.subr.bf16.mxu1 %v832_v36  ;;  %v722_v22 = vld [vmem:[%s3017_s0 + $0x798] sm:$0xff]  ;;  %v223_v23 = vld [vmem:[%s2025_s27 + $0x8] sm:$0xff]  ;;  %v234_v24 = vld [vmem:[%s2025_s27 + $0x60] sm:$0xff]  ;;  %v933_v27 = vpack.c.bf16 %v717_v16, %v715_v15  ;;  %v840_v32 = vpack.c.bf16 %v530_v20, %v528_v17 }
  0x28   : > { %1225 = vmatprep.subr.bf16.mxu0 %v928_v40  ;;  %v2053_v25 = vld [vmem:[%s3018_s1] sm:$0xff]  ;;  %v229_v29 = vld [vmem:[%s2025_s27 + $0x38] sm:$0xff]  ;;  %v240_v30 = vld [vmem:[%s2025_s27 + $0x90] sm:$0xff]  ;;  %v936_v33 = vpack.c.bf16 %v722_v22, %v720_v21 }
  0x29   : > { %v2058_v28 = vrot.slane %v2053_v25, %v309_v11  ;;  %v2063_v31 = vrot.slane %v2053_v25, %v333_v12  ;;  %v527_v34 = vld [vmem:[%s3017_s0 + $0x180] sm:$0xff]  ;;  %v529_v35 = vld [vmem:[%s3017_s0 + $0x190] sm:$0xff]  ;;  %v2077_v37 = vrot.slane %v2053_v25, %v313_v18  ;;  %v532_v39 = vld [vmem:[%s3017_s0 + $0x1a8] sm:$0xff]  ;;  %v2162_v20 = vrot.slane %v2053_v25, %v329_v0 }
  0x2a   : > { %1013 = vmatpush1.bf16.msra.mxu1 %v831_v46  ;;  %v719_v36 = vld [vmem:[%s3017_s0 + $0x780] sm:$0xff]  ;;  %v721_v38 = vld [vmem:[%s3017_s0 + $0x790] sm:$0xff]  ;;  %v534_v40 = vld [vmem:[%s3017_s0 + $0x1b8] sm:$0xff]  ;;  %v839_v47 = vpack.c.bf16 %v529_v35, %v527_v34 }
  0x2b   : > { %1226 = vmatpush1.bf16.msra.mxu0 %v927_v48  ;;  %1014 = vmatprep.subr.bf16.mxu1 %v834_v49  ;;  %v359_v41 = vmul.f32 %v2058_v28, %v223_v23  ;;  %v370_v42 = vmul.f32 %v2058_v28, %v234_v24  ;;  %v365_v43 = vmul.f32 %v2063_v31, %v229_v29  ;;  %v724_v45 = vld [vmem:[%s3017_s0 + $0x7a8] sm:$0xff]  ;;  %v726_v46 = vld [vmem:[%s3017_s0 + $0x7b8] sm:$0xff]  ;;  %v531_v52 = vld [vmem:[%s3017_s0 + $0x1a0] sm:$0xff] }
  0x2c   : > { %1227 = vmatprep.subr.bf16.mxu0 %v930_v53  ;;  %v376_v44 = vmul.f32 %v2063_v31, %v240_v30  ;;  %v935_v50 = vpack.c.bf16 %v721_v38, %v719_v36  ;;  %v842_v51 = vpack.c.bf16 %v534_v40, %v532_v39  ;;  %v533_v53 = vld [vmem:[%s3017_s0 + $0x1b0] sm:$0xff]  ;;  %v723_v54 = vld [vmem:[%s3017_s0 + $0x7a0] sm:$0xff]  ;;  %v938_v55 = vpack.c.bf16 %v726_v46, %v724_v45  ;;  %v536_v57 = vld [vmem:[%s3017_s0 + $0x1c8] sm:$0xff] }
  0x2d   : > { %v436_v48 = vpack.c.bf16 %v370_v42, %v359_v41  ;;  %v725_v56 = vld [vmem:[%s3017_s0 + $0x7b0] sm:$0xff]  ;;  %v538_v58 = vld [vmem:[%s3017_s0 + $0x1d8] sm:$0xff]  ;;  %v841_v63 = vpack.c.bf16 %v533_v53, %v531_v52  ;;  %v535_v3 = vld [vmem:[%s3017_s0 + $0x1c0] sm:$0xff]  ;;  %v325_v38 = vsub.s32 5, %v1990_v60  ;;  %v321_v42 = vsub.s32 4, %v1990_v60 }
  0x2e   : > { %1015 = vmatpush1.bf16.msra.mxu1 %v833_v59  ;;  %v442_v49 = vpack.c.bf16 %v376_v44, %v365_v43  ;;  %v728_v59 = vld [vmem:[%s3017_s0 + $0x7c8] sm:$0xff]  ;;  %v937_v1 = vpack.c.bf16 %v725_v56, %v723_v54  ;;  %v537_v4 = vld [vmem:[%s3017_s0 + $0x1d0] sm:$0xff]  ;;  %v727_v5 = vld [vmem:[%s3017_s0 + $0x7c0] sm:$0xff] }
  0x2f   : > { %1228 = vmatpush1.bf16.msra.mxu0 %v929_v61  ;;  %1016 = vmatprep.subr.bf16.mxu1 %v836_v62  ;;  %v730_v61 = vld [vmem:[%s3017_s0 + $0x7d8] sm:$0xff]  ;;  %v305_v62 = vsub.s32 0, %v1990_v60  ;;  %v729_v7 = vld [vmem:[%s3017_s0 + $0x7d0] sm:$0xff]  ;;  %v732_v10 = vld [vmem:[%s3017_s0 + $0x7e8] sm:$0xff]  ;;  %v843_v15 = vpack.c.bf16 %v537_v4, %v535_v3  ;;  %v2212_v53 = vrot.slane %v2053_v25, %v321_v42 }
  0x30   : > { %1229 = vmatprep.subr.bf16.mxu0 %v932_v2  ;;  %1028 = vmatprep.mubr.bf16.mxu1 %v436_v48  ;;  %v844_v2 = vpack.c.bf16 %v538_v58, %v536_v57  ;;  %v940_v6 = vpack.c.bf16 %v730_v61, %v728_v59  ;;  %v542_v9 = vld [vmem:[%s3017_s0 + $0x1f8] sm:$0xff]  ;;  %v541_v16 = vld [vmem:[%s3017_s0 + $0x1f0] sm:$0xff]  ;;  %v222_v17 = vld [vmem:[%s2025_s27] sm:$0xff]  ;;  %v939_v21 = vpack.c.bf16 %v729_v7, %v727_v5 }
  0x31   : > { %1241 = vmatprep.mubr.bf16.mxu0 %v442_v49  ;;  %v734_v12 = vld [vmem:[%s3017_s0 + $0x7f8] sm:$0xff]  ;;  %v731_v23 = vld [vmem:[%s3017_s0 + $0x7e0] sm:$0xff]  ;;  %v228_v24 = vld [vmem:[%s2025_s27 + $0x30] sm:$0xff]  ;;  %v2200_v48 = vrot.slane %v2053_v25, %v325_v38 }
  0x32   : > { %1017 = vmatpush1.bf16.msra.mxu1 %v835_v8  ;;  %v540_v8 = vld [vmem:[%s3017_s0 + $0x1e8] sm:$0xff]  ;;  %v733_v29 = vld [vmem:[%s3017_s0 + $0x7f0] sm:$0xff]  ;;  %v738_v34 = vld [vmem:[%s3017_s0 + $0x818] sm:$0xff]  ;;  %v364_v40 = vmul.f32 %v2162_v20, %v228_v24 }
  0x33   : > { %1230 = vmatpush1.bf16.msra.mxu0 %v931_v13  ;;  %1018 = vmatprep.subr.bf16.mxu1 %v838_v14  ;;  %v539_v13 = vld [vmem:[%s3017_s0 + $0x1e0] sm:$0xff]  ;;  %v2154_v14 = vrot.slane %v2053_v25, %v305_v62  ;;  %v846_v22 = vpack.c.bf16 %v542_v9, %v540_v8  ;;  %v544_v30 = vld [vmem:[%s3017_s0 + $0x208] sm:$0xff]  ;;  %v941_v43 = vpack.c.bf16 %v733_v29, %v731_v23  ;;  %v545_v46 = vld [vmem:[%s3017_s0 + $0x210] sm:$0xff] }
  0x34   : > { %1231 = vmatprep.subr.bf16.mxu0 %v934_v19  ;;  %v233_v19 = vld [vmem:[%s2025_s27 + $0x58] sm:$0xff]  ;;  %v845_v39 = vpack.c.bf16 %v541_v16, %v539_v13  ;;  %v543_v45 = vld [vmem:[%s3017_s0 + $0x200] sm:$0xff]  ;;  %v549_v0 = vld [vmem:[%s3017_s0 + $0x230] sm:$0xff] }
  0x35   : > { %v358_v35 = vmul.f32 %v2154_v14, %v222_v17  ;;  %v369_v36 = vmul.f32 %v2154_v14, %v233_v19  ;;  %v550_v52 = vld [vmem:[%s3017_s0 + $0x238] sm:$0xff]  ;;  %v847_v57 = vpack.c.bf16 %v545_v46, %v543_v45  ;;  %v741_v3 = vld [vmem:[%s3017_s0 + $0x830] sm:$0xff]  ;;  %v552_v4 = vld [vmem:[%s3017_s0 + $0x248] sm:$0xff] }
  0x36   : > { %1019 = vmatpush1.bf16.msra.mxu1 %v837_v26  ;;  %v239_v26 = vld [vmem:[%s2025_s27 + $0x88] sm:$0xff]  ;;  %v742_v56 = vld [vmem:[%s3017_s0 + $0x838] sm:$0xff]  ;;  %v551_v9 = vld [vmem:[%s3017_s0 + $0x240] sm:$0xff] }
  0x37   : > { %1232 = vmatpush1.bf16.msra.mxu0 %v933_v27  ;;  %1020 = vmatprep.subr.bf16.mxu1 %v840_v32  ;;  %v942_v27 = vpack.c.bf16 %v734_v12, %v732_v10  ;;  %v546_v32 = vld [vmem:[%s3017_s0 + $0x218] sm:$0xff]  ;;  %v375_v41 = vmul.f32 %v2162_v20, %v239_v26  ;;  %v435_v54 = vpack.c.bf16 %v369_v36, %v358_v35  ;;  %v553_v10 = vld [vmem:[%s3017_s0 + $0x250] sm:$0xff]  ;;  %v556_v17 = vld [vmem:[%s3017_s0 + $0x268] sm:$0xff] }
  0x38   : > { %1233 = vmatprep.subr.bf16.mxu0 %v936_v33  ;;  %v736_v33 = vld [vmem:[%s3017_s0 + $0x808] sm:$0xff]  ;;  %v848_v44 = vpack.c.bf16 %v546_v32, %v544_v30  ;;  %v554_v5 = vld [vmem:[%s3017_s0 + $0x258] sm:$0xff]  ;;  %v745_v16 = vld [vmem:[%s3017_s0 + $0x850] sm:$0xff]  ;;  %v851_v29 = vpack.c.bf16 %v553_v10, %v551_v9 }
  0x39   : > { %v944_v49 = vpack.c.bf16 %v738_v34, %v736_v33  ;;  %v441_v58 = vpack.c.bf16 %v375_v41, %v364_v40  ;;  %v746_v7 = vld [vmem:[%s3017_s0 + $0x858] sm:$0xff]  ;;  %v852_v13 = vpack.c.bf16 %v554_v5, %v552_v4  ;;  %v555_v24 = vld [vmem:[%s3017_s0 + $0x260] sm:$0xff]  ;;  %v557_v26 = vld [vmem:[%s3017_s0 + $0x270] sm:$0xff] }
  0x3a   : > { %1021 = vmatpush1.bf16.msra.mxu1 %v839_v47  ;;  %v735_v47 = vld [vmem:[%s3017_s0 + $0x800] sm:$0xff]  ;;  %v750_v23 = vld [vmem:[%s3017_s0 + $0x878] sm:$0xff]  ;;  %v749_v32 = vld [vmem:[%s3017_s0 + $0x870] sm:$0xff] }
  0x3b   : > { %1234 = vmatpush1.bf16.msra.mxu0 %v935_v50  ;;  %1022 = vmatprep.subr.bf16.mxu1 %v842_v51  ;;  %v737_v50 = vld [vmem:[%s3017_s0 + $0x810] sm:$0xff]  ;;  %v548_v51 = vld [vmem:[%s3017_s0 + $0x228] sm:$0xff]  ;;  %v262_v34 = vld [vmem:[%s2025_s27 + $0x140] sm:$0xff] }
  0x3c   : > { %1235 = vmatprep.subr.bf16.mxu0 %v938_v55  ;;  %v740_v55 = vld [vmem:[%s3017_s0 + $0x828] sm:$0xff]  ;;  %v943_v59 = vpack.c.bf16 %v737_v50, %v735_v47  ;;  %v850_v61 = vpack.c.bf16 %v550_v52, %v548_v51  ;;  %v245_v40 = vld [vmem:[%s2025_s27 + $0xb8] sm:$0xff]  ;;  %v256_v41 = vld [vmem:[%s2025_s27 + $0x110] sm:$0xff] }
  0x3d   : > { %v251_v33 = vld [vmem:[%s2025_s27 + $0xe8] sm:$0xff]  ;;  %v392_v45 = vmul.f32 %v2058_v28, %v256_v41  ;;  %v250_v46 = vld [vmem:[%s2025_s27 + $0xe0] sm:$0xff]  ;;  %v261_v47 = vld [vmem:[%s2025_s27 + $0x138] sm:$0xff] }
  0x3e   : > { %1023 = vmatpush1.bf16.msra.mxu1 %v841_v63  ;;  %v547_v63 = vld [vmem:[%s3017_s0 + $0x220] sm:$0xff]  ;;  %v560_v36 = vld [vmem:[%s3017_s0 + $0x288] sm:$0xff]  ;;  %v387_v38 = vmul.f32 %v2063_v31, %v251_v33  ;;  %v754_v50 = vld [vmem:[%s3017_s0 + $0x898] sm:$0xff]  ;;  %v386_v52 = vmul.f32 %v2162_v20, %v250_v46 }
  0x3f   : > { %1236 = vmatpush1.bf16.msra.mxu0 %v937_v1  ;;  %1024 = vmatprep.subr.bf16.mxu1 %v844_v2  ;;  %v739_v1 = vld [vmem:[%s3017_s0 + $0x820] sm:$0xff]  ;;  %v946_v2 = vpack.c.bf16 %v742_v56, %v740_v55  ;;  %v849_v8 = vpack.c.bf16 %v549_v0, %v547_v63  ;;  %v244_v55 = vld [vmem:[%s2025_s27 + $0xb0] sm:$0xff]  ;;  %v853_v56 = vpack.c.bf16 %v557_v26, %v555_v24  ;;  %v255_v63 = vld [vmem:[%s2025_s27 + $0x108] sm:$0xff] }
  0x40   : > { %1237 = vmatprep.subr.bf16.mxu0 %v940_v6  ;;  %v744_v6 = vld [vmem:[%s3017_s0 + $0x848] sm:$0xff]  ;;  %v945_v12 = vpack.c.bf16 %v741_v3, %v739_v1  ;;  %v380_v0 = vmul.f32 %v2154_v14, %v244_v55  ;;  %v753_v3 = vld [vmem:[%s3017_s0 + $0x890] sm:$0xff]  ;;  %v758_v10 = vld [vmem:[%s3017_s0 + $0x8b8] sm:$0xff] }
  0x41   : > { %v948_v19 = vpack.c.bf16 %v746_v7, %v744_v6  ;;  %v564_v4 = vld [vmem:[%s3017_s0 + $0x2a8] sm:$0xff]  ;;  %v391_v6 = vmul.f32 %v2154_v14, %v255_v63  ;;  %v762_v41 = vld [vmem:[%s3017_s0 + $0x8d8] sm:$0xff]  ;;  %v569_v55 = vld [vmem:[%s3017_s0 + $0x2d0] sm:$0xff] }
  0x42   : > { %1025 = vmatpush1.bf16.msra.mxu1 %v843_v15  ;;  %v743_v15 = vld [vmem:[%s3017_s0 + $0x840] sm:$0xff]  ;;  %v756_v9 = vld [vmem:[%s3017_s0 + $0x8a8] sm:$0xff] }
  0x43   : > { %1238 = vmatpush1.bf16.msra.mxu0 %v939_v21  ;;  %1026 = vmatprep.subr.bf16.mxu1 %v846_v22  ;;  %v558_v21 = vld [vmem:[%s3017_s0 + $0x278] sm:$0xff]  ;;  %v748_v22 = vld [vmem:[%s3017_s0 + $0x868] sm:$0xff]  ;;  %v947_v30 = vpack.c.bf16 %v745_v16, %v743_v15  ;;  %v2341_v15 = vld [vmem:[%s3017_s0 + $0x8a0] sm:$0xff]  ;;  %v446_v16 = vpack.c.bf16 %v391_v6, %v380_v0  ;;  %v954_v33 = vpack.c.bf16 %v758_v10, %v756_v9 }
  0x44   : > { %1239 = vmatprep.subr.bf16.mxu0 %v942_v27  ;;  %v747_v27 = vld [vmem:[%s3017_s0 + $0x860] sm:$0xff]  ;;  %v854_v35 = vpack.c.bf16 %v558_v21, %v556_v17  ;;  %v950_v42 = vpack.c.bf16 %v750_v23, %v748_v22  ;;  %v757_v21 = vld [vmem:[%s3017_s0 + $0x8b0] sm:$0xff]  ;;  %v273_v22 = vld [vmem:[%s2025_s27 + $0x198] sm:$0xff] }
  0x45   : > { %v284_v23 = vld [vmem:[%s2025_s27 + $0x1f0] sm:$0xff]  ;;  %v568_v26 = vld [vmem:[%s3017_s0 + $0x2c8] sm:$0xff]  ;;  %v574_v0 = vld [vmem:[%s3017_s0 + $0x2f8] sm:$0xff] }
  0x46   : > { %1027 = vmatpush1.bf16.msra.mxu1 %v845_v39  ;;  %v398_v39 = vmul.f32 %v2063_v31, %v262_v34  ;;  %v570_v34 = vld [vmem:[%s3017_s0 + $0x2d8] sm:$0xff]  ;;  %v572_v63 = vld [vmem:[%s3017_s0 + $0x2e8] sm:$0xff] }
  0x47   : > { %1240 = vmatpush1.bf16.msra.mxu0 %v941_v43  ;;  %1067 = vmatprep.subr.bf16.mxu1 %v848_v44  ;;  %v562_v43 = vld [vmem:[%s3017_s0 + $0x298] sm:$0xff]  ;;  %v381_v44 = vmul.f32 %v2058_v28, %v245_v40  ;;  %v760_v40 = vld [vmem:[%s3017_s0 + $0x8c8] sm:$0xff]  ;;  %v862_v10 = vpack.c.bf16 %v574_v0, %v572_v63  ;;  %v773_v63 = vld [vmem:[%s3017_s0 + $0x930] sm:$0xff] }
  0x48   : > { %1280 = vmatprep.subr.bf16.mxu0 %v944_v49  ;;  %v752_v49 = vld [vmem:[%s3017_s0 + $0x888] sm:$0xff]  ;;  %v453_v51 = vpack.c.bf16 %v398_v39, %v387_v38  ;;  %v856_v1 = vpack.c.bf16 %v562_v43, %v560_v36  ;;  %v272_v38 = vld [vmem:[%s2025_s27 + $0x190] sm:$0xff]  ;;  %v289_v9 = vld [vmem:[%s2025_s27 + $0x218] sm:$0xff] }
  0x49   : > { %1029 = vmatmul.mubr.bf16.vlgmr.msra.gmra.mrb[0].mxu1 %v435_v54  ;;  %v397_v54 = vmul.f32 %v2162_v20, %v261_v47  ;;  %v952_v7 = vpack.c.bf16 %v754_v50, %v752_v49  ;;  %v283_v39 = vld [vmem:[%s2025_s27 + $0x1e8] sm:$0xff]  ;;  %v408_v43 = vmul.f32 %v2162_v20, %v272_v38  ;;  %v953_v47 = vpack.c.bf16 %v757_v21, %v2341_v15  ;;  %v567_v49 = vld [vmem:[%s3017_s0 + $0x2c0] sm:$0xff]  ;;  %v769_v38 = vld [vmem:[%s3017_s0 + $0x910] sm:$0xff] }
  0x4a   : > { %1068 = vmatpush1.bf16.msra.mxu1 %v847_v57  ;;  %1242 = vmatmul.mubr.bf16.vlgmr.msra.gmra.mrb[0].mxu0 %v441_v58  ;;  %v949_v57 = vpack.c.bf16 %v749_v32, %v747_v27  ;;  %v559_v58 = vld [vmem:[%s3017_s0 + $0x280] sm:$0xff]  ;;  %v409_v27 = vmul.f32 %v2063_v31, %v273_v22  ;;  %v576_v22 = vld [vmem:[%s3017_s0 + $0x308] sm:$0xff] }
  0x4b   : > { %1281 = vmatpush1.bf16.msra.mxu0 %v943_v59  ;;  %1069 = vmatprep.subr.bf16.mxu1 %v850_v61  ;;  %v561_v59 = vld [vmem:[%s3017_s0 + $0x290] sm:$0xff]  ;;  %v447_v61 = vpack.c.bf16 %v392_v45, %v381_v44  ;;  %v452_v5 = vpack.c.bf16 %v397_v54, %v386_v52  ;;  %v278_v32 = vld [vmem:[%s2025_s27 + $0x1c0] sm:$0xff]  ;;  %v419_v44 = vmul.f32 %v2162_v20, %v283_v39  ;;  %v580_v39 = vld [vmem:[%s3017_s0 + $0x328] sm:$0xff] }
  0x4c   : > { %1282 = vmatprep.subr.bf16.mxu0 %v946_v2  ;;  %v751_v2 = vld [vmem:[%s3017_s0 + $0x880] sm:$0xff]  ;;  %1251 = vmatprep.mubr.bf16.mxu0 %v453_v51  ;;  %v855_v17 = vpack.c.bf16 %v561_v59, %v559_v58  ;;  %v414_v36 = vmul.f32 %v2058_v28, %v278_v32  ;;  %v277_v51 = vld [vmem:[%s2025_s27 + $0x1b8] sm:$0xff]  ;;  %v860_v54 = vpack.c.bf16 %v570_v34, %v568_v26  ;;  %v288_v26 = vld [vmem:[%s2025_s27 + $0x210] sm:$0xff] }
  0x4d   : > { %1038 = vmatprep.mubr.bf16.mxu1 %v447_v61  ;;  %v266_v45 = vld [vmem:[%s2025_s27 + $0x160] sm:$0xff]  ;;  %v463_v58 = vpack.c.bf16 %v419_v44, %v408_v43  ;;  %v413_v59 = vmul.f32 %v2154_v14, %v277_v51  ;;  %v956_v61 = vpack.c.bf16 %v762_v41, %v760_v40  ;;  %v772_v43 = vld [vmem:[%s3017_s0 + $0x928] sm:$0xff]  ;;  %v774_v44 = vld [vmem:[%s3017_s0 + $0x938] sm:$0xff] }
  0x4e   : > { %1070 = vmatpush1.bf16.msra.mxu1 %v849_v8  ;;  %v566_v8 = vld [vmem:[%s3017_s0 + $0x2b8] sm:$0xff]  ;;  %v402_v52 = vmul.f32 %v2154_v14, %v266_v45  ;;  %v584_v0 = vld [vmem:[%s3017_s0 + $0x348] sm:$0xff] }
  0x4f   : > { %1283 = vmatpush1.bf16.msra.mxu0 %v945_v12  ;;  %1071 = vmatprep.subr.bf16.mxu1 %v852_v13  ;;  %v563_v12 = vld [vmem:[%s3017_s0 + $0x2a0] sm:$0xff]  ;;  %v565_v13 = vld [vmem:[%s3017_s0 + $0x2b0] sm:$0xff]  ;;  %v858_v24 = vpack.c.bf16 %v566_v8, %v564_v4  ;;  %v295_v8 = vld [vmem:[%s2025_s27 + $0x248] sm:$0xff] }
  0x50   : > { %1284 = vmatprep.subr.bf16.mxu0 %v948_v19  ;;  %v951_v19 = vpack.c.bf16 %v753_v3, %v751_v2  ;;  %v857_v46 = vpack.c.bf16 %v565_v13, %v563_v12  ;;  %v766_v2 = vld [vmem:[%s3017_s0 + $0x8f8] sm:$0xff]  ;;  %v571_v3 = vld [vmem:[%s3017_s0 + $0x2e0] sm:$0xff]  ;;  %v457_v4 = vpack.c.bf16 %v413_v59, %v402_v52  ;;  %v765_v13 = vld [vmem:[%s3017_s0 + $0x8f0] sm:$0xff]  ;;  %v431_v15 = vmul.f32 %v2063_v31, %v295_v8 }
  0x51   : > { %1039 = vmatmul.mubr.bf16.gmra.mrb[4].mxu1 %v446_v16  ;;  %v763_v12 = vld [vmem:[%s3017_s0 + $0x8e0] sm:$0xff]  ;;  %v425_v16 = vmul.f32 %v2058_v28, %v289_v9  ;;  %v225_v52 = vld [vmem:[%s2025_s27 + $0x18] sm:$0xff] }
  0x52   : > { %1072 = vmatpush1.bf16.msra.mxu1 %v851_v29  ;;  %1252 = vmatmul.mubr.bf16.gmra.mrb[4].mxu0 %v452_v5  ;;  %v420_v29 = vmul.f32 %v2063_v31, %v284_v23  ;;  %v859_v5 = vpack.c.bf16 %v569_v55, %v567_v49  ;;  %v578_v23 = vld [vmem:[%s3017_s0 + $0x318] sm:$0xff] }
  0x53   : > { %1285 = vmatpush1.bf16.msra.mxu0 %v947_v30  ;;  %1073 = vmatprep.subr.bf16.mxu1 %v854_v35  ;;  %v267_v30 = vld [vmem:[%s2025_s27 + $0x168] sm:$0xff]  ;;  %v770_v31 = vld [vmem:[%s3017_s0 + $0x918] sm:$0xff] }
  0x54   : > { %1286 = vmatprep.subr.bf16.mxu0 %v950_v42  ;;  %v403_v35 = vmul.f32 %v2058_v28, %v267_v30  ;;  %v464_v42 = vpack.c.bf16 %v420_v29, %v409_v27  ;;  %v768_v28 = vld [vmem:[%s3017_s0 + $0x908] sm:$0xff]  ;;  %v475_v27 = vpack.c.bf16 %v431_v15, %v431_v15  ;;  %v469_v29 = vpack.c.bf16 %v425_v16, %v425_v16  ;;  %v775_v15 = vld [vmem:[%s3017_s0 + $0x940] sm:$0xff] }
  0x55   : > { %v424_v30 = vmul.f32 %v2154_v14, %v288_v26  ;;  %v767_v14 = vld [vmem:[%s3017_s0 + $0x900] sm:$0xff]  ;;  %v960_v41 = vpack.c.bf16 %v770_v31, %v768_v28 }
  0x56   : > { %1074 = vmatpush1.bf16.msra.mxu1 %v853_v56  ;;  %v458_v50 = vpack.c.bf16 %v414_v36, %v403_v35  ;;  %v759_v56 = vld [vmem:[%s3017_s0 + $0x8c0] sm:$0xff]  ;;  %1261 = vmatprep.mubr.bf16.mxu0 %v464_v42  ;;  %v957_v35 = vpack.c.bf16 %v765_v13, %v763_v12  ;;  %v864_v36 = vpack.c.bf16 %v578_v23, %v576_v22  ;;  %v582_v42 = vld [vmem:[%s3017_s0 + $0x338] sm:$0xff]  ;;  %v585_v13 = vld [vmem:[%s3017_s0 + $0x350] sm:$0xff] }
  0x57   : > { %1287 = vmatpush1.bf16.msra.mxu0 %v949_v57  ;;  %1075 = vmatprep.subr.bf16.mxu1 %v856_v1  ;;  %v761_v57 = vld [vmem:[%s3017_s0 + $0x8d0] sm:$0xff]  ;;  %v764_v1 = vld [vmem:[%s3017_s0 + $0x8e8] sm:$0xff]  ;;  %v468_v45 = vpack.c.bf16 %v424_v30, %v424_v30  ;;  %v866_v55 = vpack.c.bf16 %v582_v42, %v580_v39  ;;  %v583_v12 = vld [vmem:[%s3017_s0 + $0x340] sm:$0xff] }
  0x58   : > { %1288 = vmatprep.subr.bf16.mxu0 %v952_v7  ;;  %1048 = vmatprep.mubr.bf16.mxu1 %v458_v50  ;;  %v955_v6 = vpack.c.bf16 %v761_v57, %v759_v56  ;;  %v573_v7 = vld [vmem:[%s3017_s0 + $0x2f0] sm:$0xff]  ;;  %v958_v21 = vpack.c.bf16 %v766_v2, %v764_v1  ;;  %v959_v50 = vpack.c.bf16 %v769_v38, %v767_v14  ;;  %v579_v56 = vld [vmem:[%s3017_s0 + $0x320] sm:$0xff]  ;;  %v586_v1 = vld [vmem:[%s3017_s0 + $0x358] sm:$0xff] }
  0x59   : > { %1049 = vmatmul.mubr.bf16.gmra.mrb[8].mxu1 %v457_v4  ;;  %v861_v32 = vpack.c.bf16 %v573_v7, %v571_v3  ;;  %v581_v57 = vld [vmem:[%s3017_s0 + $0x330] sm:$0xff]  ;;  %v776_v4 = vld [vmem:[%s3017_s0 + $0x948] sm:$0xff]  ;;  %v782_v23 = vld [vmem:[%s3017_s0 + $0x978] sm:$0xff] }
  0x5a   : > { %1076 = vmatpush1.bf16.msra.mxu1 %v855_v17  ;;  %1262 = vmatmul.mubr.bf16.gmra.mrb[8].mxu0 %v463_v58  ;;  %v294_v17 = vld [vmem:[%s2025_s27 + $0x240] sm:$0xff]  ;;  %v865_v7 = vpack.c.bf16 %v581_v57, %v579_v56  ;;  %v780_v22 = vld [vmem:[%s3017_s0 + $0x968] sm:$0xff]  ;;  %v597_v56 = vld [vmem:[%s3017_s0 + $0x3b0] sm:$0xff] }
  0x5b   : > { %1289 = vmatpush1.bf16.msra.mxu0 %v951_v19  ;;  %1077 = vmatprep.subr.bf16.mxu1 %v858_v24  ;;  %v317_v19 = vsub.s32 3, %v1990_v60  ;;  %v430_v24 = vmul.f32 %v2162_v20, %v294_v17  ;;  %v577_v20 = vld [vmem:[%s3017_s0 + $0x310] sm:$0xff]  ;;  %v771_v58 = vld [vmem:[%s3017_s0 + $0x920] sm:$0xff]  ;;  %v966_v30 = vpack.c.bf16 %v782_v23, %v780_v22  ;;  %v608_v23 = vld [vmem:[%s3017_s0 + $0x408] sm:$0xff] }
  0x5c   : > { %1290 = vmatprep.subr.bf16.mxu0 %v954_v33  ;;  %v575_v33 = vld [vmem:[%s3017_s0 + $0x300] sm:$0xff]  ;;  %1271 = vmatprep.mubr.bf16.mxu0 %v475_v27  ;;  %v961_v9 = vpack.c.bf16 %v773_v63, %v771_v58  ;;  %v777_v17 = vld [vmem:[%s3017_s0 + $0x950] sm:$0xff]  ;;  %v792_v63 = vld [vmem:[%s3017_s0 + $0x9c8] sm:$0xff] }
  0x5d   : > { %v474_v34 = vpack.c.bf16 %v430_v24, %v430_v24  ;;  %v2448_v40 = vrot.slane %v2053_v25, %v317_v19  ;;  %1058 = vmatprep.mubr.bf16.mxu1 %v469_v29  ;;  %v231_v25 = vld [vmem:[%s2025_s27 + $0x48] sm:$0xff]  ;;  %v863_v49 = vpack.c.bf16 %v577_v20, %v575_v33  ;;  %v867_v24 = vpack.c.bf16 %v585_v13, %v583_v12  ;;  %v587_v31 = vld [vmem:[%s3017_s0 + $0x360] sm:$0xff]  ;;  %v589_v27 = vld [vmem:[%s3017_s0 + $0x370] sm:$0xff] }
  0x5e   : > { %1078 = vmatpush1.bf16.msra.mxu1 %v857_v46  ;;  %v242_v46 = vld [vmem:[%s2025_s27 + $0xa0] sm:$0xff]  ;;  %v588_v19 = vld [vmem:[%s3017_s0 + $0x368] sm:$0xff]  ;;  %v963_v26 = vpack.c.bf16 %v777_v17, %v775_v15  ;;  %v594_v20 = vld [vmem:[%s3017_s0 + $0x398] sm:$0xff] }
  0x5f   : > { %1291 = vmatpush1.bf16.msra.mxu0 %v953_v47  ;;  %1079 = vmatprep.subr.bf16.mxu1 %v860_v54  ;;  %v2464_v47 = vld [vmem:[%s3018_s1 + $0x8] sm:$0x7]  ;;  %v236_v54 = vld [vmem:[%s2025_s27 + $0x70] sm:$0xff]  ;;  %v779_v29 = vld [vmem:[%s3017_s0 + $0x960] sm:$0xff] }
  0x60   : > { %1292 = vmatprep.subr.bf16.mxu0 %v956_v61  ;;  %v2469_v51 = vrot.slane %v2464_v47, %v309_v11  ;;  %v361_v11 = vmul.f32 %v2448_v40, %v225_v52  ;;  %v372_v59 = vmul.f32 %v2448_v40, %v236_v54  ;;  %v962_v61 = vpack.c.bf16 %v774_v44, %v772_v43  ;;  %v592_v33 = vld [vmem:[%s3017_s0 + $0x388] sm:$0xff]  ;;  %v591_v39 = vld [vmem:[%s3017_s0 + $0x380] sm:$0xff]  ;;  %v785_v44 = vld [vmem:[%s3017_s0 + $0x990] sm:$0xff] }
  0x61   : > { %1059 = vmatmul.mubr.bf16.gmra.mrb[12].mxu1 %v468_v45  ;;  %v872_v38 = vpack.c.bf16 %v594_v20, %v592_v33  ;;  %v783_v42 = vld [vmem:[%s3017_s0 + $0x980] sm:$0xff]  ;;  %v596_v45 = vld [vmem:[%s3017_s0 + $0x3a8] sm:$0xff]  ;;  %v798_v13 = vld [vmem:[%s3017_s0 + $0x9f8] sm:$0xff]  ;;  %v2636_v22 = vrot.slane %v2464_v47, %v305_v62 }
  0x62   : > { %1080 = vmatpush1.bf16.msra.mxu1 %v859_v5  ;;  %1272 = vmatmul.mubr.bf16.gmra.mrb[12].mxu0 %v474_v34  ;;  %v367_v2 = vmul.f32 %v2469_v51, %v231_v25  ;;  %v378_v3 = vmul.f32 %v2469_v51, %v242_v46  ;;  %v778_v5 = vld [vmem:[%s3017_s0 + $0x958] sm:$0xff]  ;;  %v784_v34 = vld [vmem:[%s3017_s0 + $0x988] sm:$0xff]  ;;  %v967_v52 = vpack.c.bf16 %v785_v44, %v783_v42  ;;  %v787_v57 = vld [vmem:[%s3017_s0 + $0x9a0] sm:$0xff] }
  0x63   : > { %1293 = vmatpush1.bf16.msra.mxu0 %v955_v6  ;;  %1081 = vmatprep.subr.bf16.mxu1 %v862_v10  ;;  %v438_v6 = vpack.c.bf16 %v372_v59, %v361_v11  ;;  %v868_v10 = vpack.c.bf16 %v586_v1, %v584_v0  ;;  %v964_v16 = vpack.c.bf16 %v778_v5, %v776_v4  ;;  %v598_v25 = vld [vmem:[%s3017_s0 + $0x3b8] sm:$0xff]  ;;  %v788_v46 = vld [vmem:[%s3017_s0 + $0x9a8] sm:$0xff]  ;;  %v789_v11 = vld [vmem:[%s3017_s0 + $0x9b0] sm:$0xff] }
  0x64   : > { %1294 = vmatprep.subr.bf16.mxu0 %v958_v21  ;;  %v444_v8 = vpack.c.bf16 %v378_v3, %v367_v2  ;;  %v590_v21 = vld [vmem:[%s3017_s0 + $0x378] sm:$0xff]  ;;  %v874_v54 = vpack.c.bf16 %v598_v25, %v596_v45  ;;  %v600_v59 = vld [vmem:[%s3017_s0 + $0x3c8] sm:$0xff]  ;;  %v599_v2 = vld [vmem:[%s3017_s0 + $0x3c0] sm:$0xff]  ;;  %v969_v4 = vpack.c.bf16 %v789_v11, %v787_v57 }
  0x65   : > { %1099 = vmatprep.mubr.bf16.mxu1 %v438_v6  ;;  %v870_v28 = vpack.c.bf16 %v590_v21, %v588_v19  ;;  %v794_v0 = vld [vmem:[%s3017_s0 + $0x9d8] sm:$0xff]  ;;  %v601_v3 = vld [vmem:[%s3017_s0 + $0x3d0] sm:$0xff]  ;;  %v791_v6 = vld [vmem:[%s3017_s0 + $0x9c0] sm:$0xff] }
  0x66   : > { %1082 = vmatpush1.bf16.msra.mxu1 %v861_v32  ;;  %1312 = vmatprep.mubr.bf16.mxu0 %v444_v8  ;;  %v781_v32 = vld [vmem:[%s3017_s0 + $0x970] sm:$0xff]  ;;  %v604_v8 = vld [vmem:[%s3017_s0 + $0x3e8] sm:$0xff]  ;;  %v603_v15 = vld [vmem:[%s3017_s0 + $0x3e0] sm:$0xff]  ;;  %v875_v21 = vpack.c.bf16 %v601_v3, %v599_v2 }
  0x67   : > { %1295 = vmatpush1.bf16.msra.mxu0 %v957_v35  ;;  %1083 = vmatprep.subr.bf16.mxu1 %v864_v36  ;;  %v786_v35 = vld [vmem:[%s3017_s0 + $0x998] sm:$0xff]  ;;  %v869_v36 = vpack.c.bf16 %v589_v27, %v587_v31  ;;  %v965_v14 = vpack.c.bf16 %v781_v32, %v779_v29  ;;  %v796_v12 = vld [vmem:[%s3017_s0 + $0x9e8] sm:$0xff]  ;;  %v795_v17 = vld [vmem:[%s3017_s0 + $0x9e0] sm:$0xff] }
  0x68   : > { %1296 = vmatprep.subr.bf16.mxu0 %v960_v41  ;;  %v593_v41 = vld [vmem:[%s3017_s0 + $0x390] sm:$0xff]  ;;  %v968_v43 = vpack.c.bf16 %v786_v35, %v784_v34  ;;  %v610_v27 = vld [vmem:[%s3017_s0 + $0x418] sm:$0xff]  ;;  %v230_v29 = vld [vmem:[%s2025_s27 + $0x40] sm:$0xff]  ;;  %v974_v62 = vpack.c.bf16 %v798_v13, %v796_v12 }
  0x69   : > { %v797_v19 = vld [vmem:[%s3017_s0 + $0x9f0] sm:$0xff]  ;;  %v253_v32 = vld [vmem:[%s2025_s27 + $0xf8] sm:$0xff]  ;;  %v800_v20 = vld [vmem:[%s3017_s0 + $0xa08] sm:$0xff]  ;;  %v366_v42 = vmul.f32 %v2636_v22, %v230_v29  ;;  %v880_v44 = vpack.c.bf16 %v610_v27, %v608_v23 }
  0x6a   : > { %1084 = vmatpush1.bf16.msra.mxu1 %v863_v49  ;;  %v790_v49 = vld [vmem:[%s3017_s0 + $0x9b8] sm:$0xff]  ;;  %v264_v33 = vld [vmem:[%s2025_s27 + $0x150] sm:$0xff]  ;;  %v607_v45 = vld [vmem:[%s3017_s0 + $0x400] sm:$0xff] }
  0x6b   : > { %1297 = vmatpush1.bf16.msra.mxu0 %v959_v50  ;;  %1085 = vmatprep.subr.bf16.mxu1 %v866_v55  ;;  %v871_v50 = vpack.c.bf16 %v593_v41, %v591_v39  ;;  %v595_v55 = vld [vmem:[%s3017_s0 + $0x3a0] sm:$0xff]  ;;  %v970_v58 = vpack.c.bf16 %v790_v49, %v788_v46  ;;  %v973_v41 = vpack.c.bf16 %v797_v19, %v795_v17  ;;  %v609_v25 = vld [vmem:[%s3017_s0 + $0x410] sm:$0xff]  ;;  %v616_v2 = vld [vmem:[%s3017_s0 + $0x448] sm:$0xff] }
  0x6c   : > { %1298 = vmatprep.subr.bf16.mxu0 %v962_v61  ;;  %v602_v61 = vld [vmem:[%s3017_s0 + $0x3d8] sm:$0xff]  ;;  %v873_v1 = vpack.c.bf16 %v597_v56, %v595_v55  ;;  %v389_v46 = vmul.f32 %v2469_v51, %v253_v32  ;;  %v400_v49 = vmul.f32 %v2469_v51, %v264_v33  ;;  %v613_v11 = vld [vmem:[%s3017_s0 + $0x430] sm:$0xff]  ;;  %v275_v12 = vld [vmem:[%s2025_s27 + $0x1a8] sm:$0xff] }
  0x6d   : > { %v876_v5 = vpack.c.bf16 %v602_v61, %v600_v59  ;;  %v799_v59 = vld [vmem:[%s3017_s0 + $0xa00] sm:$0xff]  ;;  %v801_v61 = vld [vmem:[%s3017_s0 + $0xa10] sm:$0xff]  ;;  %v806_v3 = vld [vmem:[%s3017_s0 + $0xa38] sm:$0xff] }
  0x6e   : > { %1086 = vmatpush1.bf16.msra.mxu1 %v865_v7  ;;  %v793_v7 = vld [vmem:[%s3017_s0 + $0x9d0] sm:$0xff]  ;;  %v286_v13 = vld [vmem:[%s2025_s27 + $0x200] sm:$0xff]  ;;  %v640_v60 = vld [vmem:[%s3017_s0 + $0x508] sm:$0xff] }
  0x6f   : > { %1299 = vmatpush1.bf16.msra.mxu0 %v961_v9  ;;  %1087 = vmatprep.subr.bf16.mxu1 %v868_v10  ;;  %v972_v9 = vpack.c.bf16 %v794_v0, %v792_v63  ;;  %v606_v10 = vld [vmem:[%s3017_s0 + $0x3f8] sm:$0xff]  ;;  %v804_v63 = vld [vmem:[%s3017_s0 + $0xa28] sm:$0xff]  ;;  %v615_v33 = vld [vmem:[%s3017_s0 + $0x440] sm:$0xff] }
  0x70   : > { %1300 = vmatprep.subr.bf16.mxu0 %v964_v16  ;;  %v605_v16 = vld [vmem:[%s3017_s0 + $0x3f0] sm:$0xff]  ;;  %v878_v31 = vpack.c.bf16 %v606_v10, %v604_v8  ;;  %v618_v8 = vld [vmem:[%s3017_s0 + $0x458] sm:$0xff]  ;;  %v263_v10 = vld [vmem:[%s2025_s27 + $0x148] sm:$0xff]  ;;  %v978_v19 = vpack.c.bf16 %v806_v3, %v804_v63 }
  0x71   : > { %v877_v39 = vpack.c.bf16 %v605_v16, %v603_v15  ;;  %v975_v15 = vpack.c.bf16 %v801_v61, %v799_v59  ;;  %v803_v16 = vld [vmem:[%s3017_s0 + $0xa20] sm:$0xff]  ;;  %v399_v29 = vmul.f32 %v2636_v22, %v263_v10  ;;  %v884_v32 = vpack.c.bf16 %v618_v8, %v616_v2  ;;  %v285_v59 = vld [vmem:[%s2025_s27 + $0x1f8] sm:$0xff]  ;;  %v624_v61 = vld [vmem:[%s3017_s0 + $0x488] sm:$0xff] }
  0x72   : > { %1088 = vmatpush1.bf16.msra.mxu1 %v867_v24  ;;  %v224_v24 = vld [vmem:[%s2025_s27 + $0x10] sm:$0xff]  ;;  %v626_v63 = vld [vmem:[%s3017_s0 + $0x498] sm:$0xff]  ;;  %v291_v8 = vld [vmem:[%s2025_s27 + $0x228] sm:$0xff] }
  0x73   : > { %1301 = vmatpush1.bf16.msra.mxu0 %v963_v26  ;;  %1089 = vmatprep.subr.bf16.mxu1 %v870_v28  ;;  %v235_v26 = vld [vmem:[%s2025_s27 + $0x68] sm:$0xff]  ;;  %v971_v28 = vpack.c.bf16 %v793_v7, %v791_v6  ;;  %v360_v34 = vmul.f32 %v2077_v37, %v224_v24  ;;  %v455_v7 = vpack.c.bf16 %v400_v49, %v389_v46 }
  0x74   : > { %1302 = vmatprep.subr.bf16.mxu0 %v966_v30  ;;  %v241_v30 = vld [vmem:[%s2025_s27 + $0x98] sm:$0xff]  ;;  %v371_v35 = vmul.f32 %v2077_v37, %v235_v26 }
  0x75   : > { %v269_v26 = vld [vmem:[%s2025_s27 + $0x178] sm:$0xff] }
  0x76   : > { %1090 = vmatpush1.bf16.msra.mxu1 %v869_v36  ;;  %v802_v36 = vld [vmem:[%s3017_s0 + $0xa18] sm:$0xff]  ;;  %v437_v57 = vpack.c.bf16 %v371_v35, %v360_v34  ;;  %v411_v34 = vmul.f32 %v2469_v51, %v275_v12  ;;  %v422_v35 = vmul.f32 %v2469_v51, %v286_v13  ;;  %v421_v12 = vmul.f32 %v2636_v22, %v285_v59 }
  0x77   : > { %1303 = vmatpush1.bf16.msra.mxu0 %v965_v14  ;;  %1091 = vmatprep.subr.bf16.mxu1 %v872_v38  ;;  %v247_v14 = vld [vmem:[%s2025_s27 + $0xc8] sm:$0xff]  ;;  %v258_v38 = vld [vmem:[%s2025_s27 + $0x120] sm:$0xff]  ;;  %v888_v13 = vpack.c.bf16 %v626_v63, %v624_v61  ;;  %v1683_v59 = vmov 0  }
  0x78   : > { %1304 = vmatprep.subr.bf16.mxu0 %v968_v43  ;;  %v377_v43 = vmul.f32 %v2636_v22, %v241_v30  ;;  %v383_v55 = vmul.f32 %v2448_v40, %v247_v14  ;;  %v394_v56 = vmul.f32 %v2448_v40, %v258_v38  ;;  %v808_v30 = vld [vmem:[%s3017_s0 + $0xa48] sm:$0xff]  ;;  %v622_v14 = vld [vmem:[%s3017_s0 + $0x478] sm:$0xff]  ;;  %v639_v63 = vld [vmem:[%s3017_s0 + $0x500] sm:$0xff] }
  0x7a   : > { %1092 = vmatpush1.bf16.msra.mxu1 %v871_v50  ;;  %v612_v50 = vld [vmem:[%s3017_s0 + $0x428] sm:$0xff]  ;;  %v443_v0 = vpack.c.bf16 %v377_v43, %v366_v42  ;;  %v449_v17 = vpack.c.bf16 %v394_v56, %v383_v55  ;;  %v619_v42 = vld [vmem:[%s3017_s0 + $0x460] sm:$0xff] }
  0x7b   : > { %1305 = vmatpush1.bf16.msra.mxu0 %v967_v52  ;;  %1093 = vmatprep.subr.bf16.mxu1 %v874_v54  ;;  %v614_v52 = vld [vmem:[%s3017_s0 + $0x438] sm:$0xff]  ;;  %v976_v54 = vpack.c.bf16 %v802_v36, %v800_v20  ;;  %v617_v20 = vld [vmem:[%s3017_s0 + $0x450] sm:$0xff]  ;;  %v620_v36 = vld [vmem:[%s3017_s0 + $0x468] sm:$0xff] }
  0x7c   : > { %1306 = vmatprep.subr.bf16.mxu0 %v970_v58  ;;  %v611_v58 = vld [vmem:[%s3017_s0 + $0x420] sm:$0xff]  ;;  %v882_v6 = vpack.c.bf16 %v614_v52, %v612_v50  ;;  %v883_v50 = vpack.c.bf16 %v617_v20, %v615_v33  ;;  %v814_v52 = vld [vmem:[%s3017_s0 + $0xa78] sm:$0xff]  ;;  %v279_v55 = vld [vmem:[%s2025_s27 + $0x1c8] sm:$0xff]  ;;  %v886_v56 = vpack.c.bf16 %v622_v14, %v620_v36 }
  0x7d   : > { %v634_v33 = vld [vmem:[%s3017_s0 + $0x4d8] sm:$0xff]  ;;  %v238_v36 = vld [vmem:[%s2025_s27 + $0x80] sm:$0xff] }
  0x7e   : > { %1094 = vmatpush1.bf16.msra.mxu1 %v873_v1  ;;  %v879_v1 = vpack.c.bf16 %v609_v25, %v607_v45  ;;  %v809_v45 = vld [vmem:[%s3017_s0 + $0xa50] sm:$0xff]  ;;  %v812_v25 = vld [vmem:[%s3017_s0 + $0xa68] sm:$0xff] }
  0x7f   : > { %1307 = vmatpush1.bf16.msra.mxu0 %v969_v4  ;;  %1095 = vmatprep.subr.bf16.mxu1 %v876_v5  ;;  %v246_v4 = vld [vmem:[%s2025_s27 + $0xc0] sm:$0xff]  ;;  %v257_v5 = vld [vmem:[%s2025_s27 + $0x118] sm:$0xff]  ;;  %v982_v3 = vpack.c.bf16 %v814_v52, %v812_v25  ;;  %v2831_v25 = vrot.slane %v2464_v47, %v313_v18 }
  0x80   : > { %1308 = vmatprep.subr.bf16.mxu0 %v972_v9  ;;  %v252_v9 = vld [vmem:[%s2025_s27 + $0xf0] sm:$0xff]  ;;  %v382_v23 = vmul.f32 %v2077_v37, %v246_v4  ;;  %v393_v24 = vmul.f32 %v2077_v37, %v257_v5  ;;  %v811_v4 = vld [vmem:[%s3017_s0 + $0xa60] sm:$0xff]  ;;  %v642_v18 = vld [vmem:[%s3017_s0 + $0x518] sm:$0xff] }
  0x81   : > { %v388_v27 = vmul.f32 %v2636_v22, %v252_v9  ;;  %v813_v5 = vld [vmem:[%s3017_s0 + $0xa70] sm:$0xff]  ;;  %v896_v61 = vpack.c.bf16 %v642_v18, %v640_v60  ;;  %v667_v18 = vld [vmem:[%s3017_s0 + $0x5e0] sm:$0xff] }
  0x82   : > { %1096 = vmatpush1.bf16.msra.mxu1 %v875_v21  ;;  %v805_v21 = vld [vmem:[%s3017_s0 + $0xa30] sm:$0xff]  ;;  %v448_v46 = vpack.c.bf16 %v393_v24, %v382_v23  ;;  %v981_v23 = vpack.c.bf16 %v813_v5, %v811_v4  ;;  %v427_v24 = vmul.f32 %v2448_v40, %v291_v8  ;;  %v643_v5 = vld [vmem:[%s3017_s0 + $0x520] sm:$0xff] }
  0x83   : > { %1309 = vmatpush1.bf16.msra.mxu0 %v971_v28  ;;  %1097 = vmatprep.subr.bf16.mxu1 %v878_v31  ;;  %v280_v28 = vld [vmem:[%s2025_s27 + $0x1d0] sm:$0xff]  ;;  %v881_v31 = vpack.c.bf16 %v613_v11, %v611_v58  ;;  %v977_v38 = vpack.c.bf16 %v805_v21, %v803_v16  ;;  %v454_v49 = vpack.c.bf16 %v399_v29, %v388_v27  ;;  %v274_v11 = vld [vmem:[%s2025_s27 + $0x1a0] sm:$0xff]  ;;  %v630_v21 = vld [vmem:[%s3017_s0 + $0x4b8] sm:$0xff] }
  0x84   : > { %1310 = vmatprep.subr.bf16.mxu0 %v974_v62  ;;  %v810_v62 = vld [vmem:[%s3017_s0 + $0xa58] sm:$0xff]  ;;  %v466_v58 = vpack.c.bf16 %v422_v35, %v411_v34  ;;  %v410_v10 = vmul.f32 %v2636_v22, %v274_v11  ;;  %v625_v16 = vld [vmem:[%s3017_s0 + $0x490] sm:$0xff]  ;;  %v627_v29 = vld [vmem:[%s3017_s0 + $0x4a0] sm:$0xff]  ;;  %v471_v20 = vpack.c.bf16 %v427_v24, %v427_v24 }
  0x85   : > { %v980_v43 = vpack.c.bf16 %v810_v62, %v808_v30  ;;  %v629_v30 = vld [vmem:[%s3017_s0 + $0x4b0] sm:$0xff]  ;;  %v227_v35 = vld [vmem:[%s2025_s27 + $0x28] sm:$0xff]  ;;  %v254_v8 = vld [vmem:[%s2025_s27 + $0x100] sm:$0xff] }
  0x86   : > { %1098 = vmatpush1.bf16.msra.mxu1 %v877_v39  ;;  %v405_v39 = vmul.f32 %v2448_v40, %v269_v26  ;;  %v889_v14 = vpack.c.bf16 %v629_v30, %v627_v29  ;;  %v654_v24 = vld [vmem:[%s3017_s0 + $0x578] sm:$0xff]  ;;  %v276_v29 = vld [vmem:[%s2025_s27 + $0x1b0] sm:$0xff]  ;;  %v287_v30 = vld [vmem:[%s2025_s27 + $0x208] sm:$0xff] }
  0x87   : > { %1311 = vmatpush1.bf16.msra.mxu0 %v973_v41  ;;  %1138 = vmatprep.subr.bf16.mxu1 %v880_v44  ;;  %v416_v41 = vmul.f32 %v2448_v40, %v280_v28  ;;  %v807_v44 = vld [vmem:[%s3017_s0 + $0xa40] sm:$0xff]  ;;  %v465_v28 = vpack.c.bf16 %v421_v12, %v410_v10  ;;  %v296_v40 = vld [vmem:[%s2025_s27 + $0x250] sm:$0xff]  ;;  %v648_v10 = vld [vmem:[%s3017_s0 + $0x548] sm:$0xff] }
  0x88   : > { %1351 = vmatprep.subr.bf16.mxu0 %v976_v54  ;;  %v268_v54 = vld [vmem:[%s2025_s27 + $0x170] sm:$0xff]  ;;  %v650_v12 = vld [vmem:[%s3017_s0 + $0x558] sm:$0xff] }
  0x89   : > { %1100 = vmatmul.mubr.bf16.vlgmr.msra.gmra.mrb[0].mxu1 %v437_v57  ;;  %v621_v57 = vld [vmem:[%s3017_s0 + $0x470] sm:$0xff]  ;;  %v460_v2 = vpack.c.bf16 %v416_v41, %v405_v39  ;;  %v631_v41 = vld [vmem:[%s3017_s0 + $0x4c0] sm:$0xff] }
  0x8a   : > { %1313 = vmatmul.mubr.bf16.vlgmr.msra.gmra.mrb[0].mxu0 %v443_v0  ;;  %1139 = vmatpush1.bf16.msra.mxu1 %v879_v1  ;;  %v297_v0 = vld [vmem:[%s2025_s27 + $0x258] sm:$0xff]  ;;  %v979_v1 = vpack.c.bf16 %v809_v45, %v807_v44  ;;  %v885_v9 = vpack.c.bf16 %v621_v57, %v619_v42  ;;  %v633_v42 = vld [vmem:[%s3017_s0 + $0x4d0] sm:$0xff]  ;;  %v374_v44 = vmul.f32 %v2200_v48, %v238_v36 }
  0x8b   : > { %1140 = vmatprep.subr.bf16.mxu1 %v882_v6  ;;  %1322 = vmatprep.mubr.bf16.mxu0 %v455_v7  ;;  %v404_v6 = vmul.f32 %v2077_v37, %v268_v54  ;;  %v415_v7 = vmul.f32 %v2077_v37, %v279_v55  ;;  %v637_v54 = vld [vmem:[%s3017_s0 + $0x4f0] sm:$0xff] }
  0x8c   : > { %1352 = vmatpush1.bf16.msra.mxu0 %v975_v15  ;;  %1109 = vmatprep.mubr.bf16.mxu1 %v449_v17  ;;  %v623_v15 = vld [vmem:[%s3017_s0 + $0x480] sm:$0xff]  ;;  %v433_v17 = vmul.f32 %v2469_v51, %v297_v0  ;;  %v232_v55 = vld [vmem:[%s2025_s27 + $0x50] sm:$0xff] }
  0x8d   : > { %1353 = vmatprep.subr.bf16.mxu0 %v978_v19  ;;  %v628_v19 = vld [vmem:[%s3017_s0 + $0x4a8] sm:$0xff]  ;;  %v459_v26 = vpack.c.bf16 %v415_v7, %v404_v6  ;;  %v887_v51 = vpack.c.bf16 %v625_v16, %v623_v15  ;;  %v641_v0 = vld [vmem:[%s3017_s0 + $0x510] sm:$0xff]  ;;  %v390_v15 = vmul.f32 %v2831_v25, %v254_v8 }
  0x8e   : > { %1141 = vmatpush1.bf16.msra.mxu1 %v881_v31  ;;  %v290_v31 = vld [vmem:[%s2025_s27 + $0x220] sm:$0xff]  ;;  %v890_v27 = vpack.c.bf16 %v630_v21, %v628_v19  ;;  %v477_v62 = vpack.c.bf16 %v433_v17, %v433_v17  ;;  %v895_v4 = vpack.c.bf16 %v641_v0, %v639_v63  ;;  %v645_v7 = vld [vmem:[%s3017_s0 + $0x530] sm:$0xff]  ;;  %v900_v17 = vpack.c.bf16 %v650_v12, %v648_v10  ;;  %v271_v8 = vld [vmem:[%s2025_s27 + $0x188] sm:$0xff] }
  0x8f   : > { %1142 = vmatprep.subr.bf16.mxu1 %v884_v32  ;;  %v632_v32 = vld [vmem:[%s3017_s0 + $0x4c8] sm:$0xff]  ;;  %v426_v34 = vmul.f32 %v2077_v37, %v290_v31  ;;  %v647_v19 = vld [vmem:[%s3017_s0 + $0x540] sm:$0xff]  ;;  %v649_v21 = vld [vmem:[%s3017_s0 + $0x550] sm:$0xff] }
  0x90   : > { %1354 = vmatpush1.bf16.msra.mxu0 %v977_v38  ;;  %v432_v38 = vmul.f32 %v2636_v22, %v296_v40  ;;  %v892_v39 = vpack.c.bf16 %v634_v33, %v632_v32  ;;  %v636_v37 = vld [vmem:[%s3017_s0 + $0x4e8] sm:$0xff]  ;;  %v638_v22 = vld [vmem:[%s3017_s0 + $0x4f8] sm:$0xff]  ;;  %v412_v33 = vmul.f32 %v2831_v25, %v276_v29  ;;  %v657_v36 = vld [vmem:[%s3017_s0 + $0x590] sm:$0xff] }
  0x91   : > { %1355 = vmatprep.subr.bf16.mxu0 %v980_v43  ;;  %1110 = vmatmul.mubr.bf16.gmra.mrb[4].mxu1 %v448_v46  ;;  %v363_v43 = vmul.f32 %v2200_v48, %v227_v35  ;;  %v470_v45 = vpack.c.bf16 %v426_v34, %v426_v34  ;;  %v894_v52 = vpack.c.bf16 %v638_v22, %v636_v37  ;;  %v658_v40 = vld [vmem:[%s3017_s0 + $0x598] sm:$0xff]  ;;  %v655_v35 = vld [vmem:[%s3017_s0 + $0x580] sm:$0xff]  ;;  %v661_v22 = vld [vmem:[%s3017_s0 + $0x5b0] sm:$0xff] }
  0x92   : > { %1323 = vmatmul.mubr.bf16.gmra.mrb[4].mxu0 %v454_v49  ;;  %1143 = vmatpush1.bf16.msra.mxu1 %v883_v50  ;;  %v476_v46 = vpack.c.bf16 %v432_v38, %v432_v38  ;;  %v891_v49 = vpack.c.bf16 %v633_v42, %v631_v41  ;;  %v635_v50 = vld [vmem:[%s3017_s0 + $0x4e0] sm:$0xff]  ;;  %v662_v38 = vld [vmem:[%s3017_s0 + $0x5b8] sm:$0xff]  ;;  %v903_v41 = vpack.c.bf16 %v657_v36, %v655_v35 }
  0x93   : > { %1144 = vmatprep.subr.bf16.mxu1 %v886_v56  ;;  %1332 = vmatprep.mubr.bf16.mxu0 %v466_v58  ;;  %v243_v56 = vld [vmem:[%s2025_s27 + $0xa8] sm:$0xff]  ;;  %v440_v47 = vpack.c.bf16 %v374_v44, %v363_v43  ;;  %v893_v57 = vpack.c.bf16 %v637_v54, %v635_v50  ;;  %v368_v58 = vmul.f32 %v2831_v25, %v232_v55  ;;  %v659_v37 = vld [vmem:[%s3017_s0 + $0x5a0] sm:$0xff]  ;;  %v665_v54 = vld [vmem:[%s3017_s0 + $0x5d0] sm:$0xff] }
  0x94   : > { %1356 = vmatpush1.bf16.msra.mxu0 %v979_v1  ;;  %1119 = vmatprep.mubr.bf16.mxu1 %v460_v2  ;;  %v379_v11 = vmul.f32 %v2831_v25, %v243_v56  ;;  %v644_v1 = vld [vmem:[%s3017_s0 + $0x528] sm:$0xff]  ;;  %v646_v2 = vld [vmem:[%s3017_s0 + $0x538] sm:$0xff]  ;;  %v298_v43 = vld [vmem:[%s2025_s27 + $0x260] sm:$0xff] }
  0x95   : > { %1357 = vmatprep.subr.bf16.mxu0 %v982_v3  ;;  %v898_v6 = vpack.c.bf16 %v646_v2, %v644_v1  ;;  %v664_v44 = vld [vmem:[%s3017_s0 + $0x5c8] sm:$0xff] }
  0x96   : > { %1145 = vmatpush1.bf16.msra.mxu1 %v885_v9  ;;  %v445_v3 = vpack.c.bf16 %v379_v11, %v368_v58  ;;  %v265_v9 = vld [vmem:[%s2025_s27 + $0x158] sm:$0xff]  ;;  %v668_v55 = vld [vmem:[%s3017_s0 + $0x5e8] sm:$0xff]  ;;  %v669_v11 = vld [vmem:[%s3017_s0 + $0x5f0] sm:$0xff] }
  0x97   : > { %1146 = vmatprep.subr.bf16.mxu1 %v888_v13  ;;  %v897_v13 = vpack.c.bf16 %v645_v7, %v643_v5  ;;  %v401_v16 = vmul.f32 %v2831_v25, %v265_v9  ;;  %v909_v1 = vpack.c.bf16 %v669_v11, %v667_v18  ;;  %v259_v7 = vld [vmem:[%s2025_s27 + $0x128] sm:$0xff]  ;;  %v282_v9 = vld [vmem:[%s2025_s27 + $0x1e0] sm:$0xff] }
  0x98   : > { %1358 = vmatpush1.bf16.msra.mxu0 %v981_v23  ;;  %v652_v23 = vld [vmem:[%s3017_s0 + $0x568] sm:$0xff]  ;;  %v395_v12 = vmul.f32 %v2212_v53, %v259_v7 }
  0x99   : > { %1120 = vmatmul.mubr.bf16.gmra.mrb[8].mxu1 %v459_v26  ;;  %v456_v26 = vpack.c.bf16 %v401_v16, %v390_v15  ;;  %v902_v31 = vpack.c.bf16 %v654_v24, %v652_v23  ;;  %v418_v15 = vmul.f32 %v2200_v48, %v282_v9  ;;  %v293_v23 = vld [vmem:[%s2025_s27 + $0x238] sm:$0xff] }
  0x9a   : > { %1333 = vmatmul.mubr.bf16.gmra.mrb[8].mxu0 %v465_v28  ;;  %1147 = vmatpush1.bf16.msra.mxu1 %v887_v51  ;;  %v899_v28 = vpack.c.bf16 %v649_v21, %v647_v19  ;;  %v651_v51 = vld [vmem:[%s3017_s0 + $0x560] sm:$0xff]  ;;  %v281_v21 = vld [vmem:[%s2025_s27 + $0x1d8] sm:$0xff] }
  0x9b   : > { %1148 = vmatprep.subr.bf16.mxu1 %v890_v27  ;;  %1342 = vmatprep.mubr.bf16.mxu0 %v477_v62  ;;  %v653_v27 = vld [vmem:[%s3017_s0 + $0x570] sm:$0xff]  ;;  %v656_v62 = vld [vmem:[%s3017_s0 + $0x588] sm:$0xff]  ;;  %v270_v19 = vld [vmem:[%s2025_s27 + $0x180] sm:$0xff] }
  0x9c   : > { %1129 = vmatprep.mubr.bf16.mxu1 %v471_v20  ;;  %v901_v32 = vpack.c.bf16 %v653_v27, %v651_v51  ;;  %v423_v20 = vmul.f32 %v2831_v25, %v287_v30  ;;  %v904_v34 = vpack.c.bf16 %v658_v40, %v656_v62  ;;  %v406_v24 = vmul.f32 %v2212_v53, %v270_v19  ;;  %v292_v27 = vld [vmem:[%s2025_s27 + $0x230] sm:$0xff] }
  0x9d   : > { %v428_v29 = vmul.f32 %v2212_v53, %v292_v27 }
  0x9e   : > { %1149 = vmatpush1.bf16.msra.mxu1 %v889_v14  ;;  %v660_v14 = vld [vmem:[%s3017_s0 + $0x5a8] sm:$0xff] }
  0x9f   : > { %1150 = vmatprep.subr.bf16.mxu1 %v892_v39  ;;  %v467_v39 = vpack.c.bf16 %v423_v20, %v412_v33  ;;  %v906_v42 = vpack.c.bf16 %v662_v38, %v660_v14  ;;  %v472_v30 = vpack.c.bf16 %v428_v29, %v428_v29 }
  0xa1   : > { %1130 = vmatmul.mubr.bf16.gmra.mrb[12].mxu1 %v470_v45  ;;  %v666_v45 = vld [vmem:[%s3017_s0 + $0x5d8] sm:$0xff] }
  0xa2   : > { %1343 = vmatmul.mubr.bf16.gmra.mrb[12].mxu0 %v476_v46  ;;  %1151 = vmatpush1.bf16.msra.mxu1 %v891_v49  ;;  %v905_v46 = vpack.c.bf16 %v661_v22, %v659_v37  ;;  %v434_v49 = vmul.f32 %v2831_v25, %v298_v43  ;;  %v908_v50 = vpack.c.bf16 %v666_v45, %v664_v44  ;;  %v670_v25 = vld [vmem:[%s3017_s0 + $0x5f8] sm:$0xff] }
  0xa3   : > { %1152 = vmatprep.subr.bf16.mxu1 %v894_v52  ;;  %1383 = vmatprep.mubr.bf16.mxu0 %v1683_v59  ;;  %v663_v52 = vld [vmem:[%s3017_s0 + $0x5c0] sm:$0xff]  ;;  %v910_v58 = vpack.c.bf16 %v670_v25, %v668_v55 }
  0xa4   : > { %1170 = vmatprep.mubr.bf16.mxu1 %v440_v47  ;;  %v478_v56 = vpack.c.bf16 %v434_v49, %v434_v49  ;;  %v907_v60 = vpack.c.bf16 %v665_v54, %v663_v52  ;;  %v226_v47 = vld [vmem:[%s2025_s27 + $0x20] sm:$0xff] }
  0xa5   : > { %v362_v63 = vmul.f32 %v2212_v53, %v226_v47 }
  0xa6   : > { %1153 = vmatpush1.bf16.msra.mxu1 %v893_v57  ;;  %v237_v57 = vld [vmem:[%s2025_s27 + $0x78] sm:$0xff] }
  0xa7   : > { %1154 = vmatprep.subr.bf16.mxu1 %v896_v61  ;;  %v260_v61 = vld [vmem:[%s2025_s27 + $0x130] sm:$0xff]  ;;  %v373_v0 = vmul.f32 %v2212_v53, %v237_v57 }
  0xaa   : > { %1548 = vmatmul.mubr.msk.bf16.vlgmr.msra.gmra.mrb[0].mxu0 %vm983_vm0, %v445_v3  ;;  %1155 = vmatpush1.bf16.msra.mxu1 %v895_v4  ;;  %v396_v3 = vmul.f32 %v2200_v48, %v260_v61  ;;  %v439_v4 = vpack.c.bf16 %v373_v0, %v362_v63 }
  0xab   : > { %1156 = vmatprep.subr.bf16.mxu1 %v898_v6  ;;  %1393 = vmatprep.mubr.bf16.mxu0 %v1683_v59  ;;  %v248_v6 = vld [vmem:[%s2025_s27 + $0xd0] sm:$0xff] }
  0xac   : > { %v384_v10 = vmul.f32 %v2212_v53, %v248_v6 }
  0xae   : > { %1157 = vmatpush1.bf16.msra.mxu1 %v897_v13  ;;  %v407_v13 = vmul.f32 %v2200_v48, %v271_v8  ;;  %v450_v16 = vpack.c.bf16 %v395_v12, %v384_v10 }
  0xaf   : > { %1158 = vmatprep.subr.bf16.mxu1 %v900_v17 }
  0xb0   : > { %v462_v17 = vpack.c.bf16 %v418_v15, %v407_v13 }
  0xb2   : > { %1549 = vmatmul.mubr.msk.bf16.gmra.mrb[4].mxu0 %vm983_vm0, %v456_v26  ;;  %1159 = vmatpush1.bf16.msra.mxu1 %v899_v28  ;;  %v417_v26 = vmul.f32 %v2212_v53, %v281_v21  ;;  %v429_v28 = vmul.f32 %v2200_v48, %v293_v23 }
  0xb3   : > { %1160 = vmatprep.subr.bf16.mxu1 %v902_v31  ;;  %1403 = vmatprep.mubr.bf16.mxu0 %v1683_v59 }
  0xb4   : > { %v461_v51 = vpack.c.bf16 %v417_v26, %v406_v24  ;;  %v473_v31 = vpack.c.bf16 %v429_v28, %v429_v28 }
  0xb6   : > { %1161 = vmatpush1.bf16.msra.mxu1 %v901_v32 }
  0xb7   : > { %1162 = vmatprep.subr.bf16.mxu1 %v904_v34 }
  0xba   : > { %1550 = vmatmul.mubr.msk.bf16.gmra.mrb[8].mxu0 %vm983_vm0, %v467_v39  ;;  %1163 = vmatpush1.bf16.msra.mxu1 %v903_v41 }
  0xbb   : > { %1164 = vmatprep.subr.bf16.mxu1 %v906_v42  ;;  %1413 = vmatprep.mubr.bf16.mxu0 %v1683_v59  ;;  %v249_v59 = vld [vmem:[%s2025_s27 + $0xd8] sm:$0xff]  ;;  %s1554_s27 = sshll.u32 %s3027_s21, 4 }
  0xbc   : > { %v385_v2 = vmul.f32 %v2200_v48, %v249_v59  ;;  %s2985_s6 = scalar_lea.vmem %s3020_s3, %s1554_s27 }
  0xbe   : > { %1165 = vmatpush1.bf16.msra.mxu1 %v905_v46  ;;  %v451_v5 = vpack.c.bf16 %v396_v3, %v385_v2 }
  0xbf   : > { %1166 = vmatprep.subr.bf16.mxu1 %v908_v50 }
  0xc2   : > { %1551 = vmatmul.mubr.msk.bf16.gmra.mrb[12].mxu0 %vm983_vm0, %v478_v56  ;;  %1167 = vmatpush1.bf16.msra.mxu1 %v907_v60 }
  0xc3   : > { %1168 = vmatprep.subr.bf16.mxu1 %v910_v58 }
  0xc6   : > { %1169 = vmatpush1.bf16.msra.mxu1 %v909_v1 }
  0xc9   : > { %1171 = vmatmul.mubr.bf16.vlgmr.msra.gmra.mrb[0].mxu1 %v439_v4 }
  0xca   : > { %1180 = vmatprep.mubr.bf16.mxu1 %v451_v5 }
  0xd1   : > { %1181 = vmatmul.mubr.bf16.gmra.mrb[4].mxu1 %v450_v16 }
  0xd2   : > { %1190 = vmatprep.mubr.bf16.mxu1 %v462_v17 }
  0xd9   : > { %1191 = vmatmul.mubr.bf16.gmra.mrb[8].mxu1 %v461_v51 }
  0xda   : > { %1200 = vmatprep.mubr.bf16.mxu1 %v473_v31 }
  0xe1   : > { %1201 = vmatmul.mubr.bf16.gmra.mrb[12].mxu1 %v472_v30 }
 0x17d   : > { %v1385_v62 = vpop.f32.mrb[0].mxu0 }
 0x17e   : > { %v1387_v40 = vpop.f32.mrb[1].mxu0 }
 0x17f   : > { %v1389_v32 = vpop.f32.mrb[2].mxu0 }
 0x180   : > { %v1391_v33 = vpop.f32.mrb[3].mxu0 }
 0x185   : > { %v1395_v20 = vpop.f32.mrb[4].mxu0 }
 0x186   : > { %v1397_v34 = vpop.f32.mrb[5].mxu0 }
 0x187   : > { %v1399_v35 = vpop.f32.mrb[6].mxu0 }
 0x188   : > { %v1401_v36 = vpop.f32.mrb[7].mxu0 }
 0x18d   : > { %v1405_v14 = vpop.f32.mrb[8].mxu0 }
 0x18e   : > { %v1407_v48 = vpop.f32.mrb[9].mxu0 }
 0x18f   : > { %v1409_v38 = vpop.f32.mrb[10].mxu0 }
 0x190   : > { %v1411_v39 = vpop.f32.mrb[11].mxu0 }
 0x195   : > { %v1415_v41 = vpop.f32.mrb[12].mxu0 }
 0x196   : > { %v1417_v42 = vpop.f32.mrb[13].mxu0 }
 0x197   : > { %v1419_v37 = vpop.f32.mrb[14].mxu0 }
 0x198   : > { %v1420_v53 = vpop.f32.mrb[15].mxu0 }
 0x19c   : > { %v1172_v22 = vpop.f32.mrb[0].mxu1 }
 0x19d   : > { %v1555_v43 = vadd.f32 %v1385_v62, %v1172_v22  ;;  %v1174_v44 = vpop.f32.mrb[1].mxu1 }
 0x19e   : > { %v1556_v45 = vadd.f32 %v1387_v40, %v1174_v44  ;;  %v1176_v46 = vpop.f32.mrb[2].mxu1 }
 0x19f   : > { %1422 = vst [vmem:[%s2985_s6] sm:$0xff] %v1555_v43  ;;  %v1557_v49 = vadd.f32 %v1389_v32, %v1176_v46  ;;  %v1178_v50 = vpop.f32.mrb[3].mxu1 }
 0x1a0   : > { %1424 = vst.msk [vmem:[%s2985_s6 + $0x8] sm:$0xff] %vm1423_vm1, %v1556_v45  ;;  %v1558_v52 = vadd.f32 %v1391_v33, %v1178_v50 }
 0x1a1   : > { %1425 = vst [vmem:[%s2985_s6 + $0x10] sm:$0xff] %v1557_v49 }
 0x1a2   : > { %1426 = vst.msk [vmem:[%s2985_s6 + $0x18] sm:$0xff] %vm1423_vm1, %v1558_v52 }
 0x1a4   : > { %v1182_v54 = vpop.f32.mrb[4].mxu1 }
 0x1a5   : > { %v1559_v55 = vadd.f32 %v1395_v20, %v1182_v54  ;;  %v1184_v25 = vpop.f32.mrb[5].mxu1 }
 0x1a6   : > { %v1560_v56 = vadd.f32 %v1397_v34, %v1184_v25  ;;  %v1186_v60 = vpop.f32.mrb[6].mxu1 }
 0x1a7   : > { %1427 = vst [vmem:[%s2985_s6 + $0x20] sm:$0xff] %v1559_v55  ;;  %v1561_v18 = vadd.f32 %v1399_v35, %v1186_v60  ;;  %v1188_v47 = vpop.f32.mrb[7].mxu1 }
 0x1a8   : > { %1428 = vst.msk [vmem:[%s2985_s6 + $0x28] sm:$0xff] %vm1423_vm1, %v1560_v56  ;;  %v1562_v57 = vadd.f32 %v1401_v36, %v1188_v47 }
 0x1a9   : > { %1429 = vst [vmem:[%s2985_s6 + $0x30] sm:$0xff] %v1561_v18 }
 0x1aa   : > { %1430 = vst.msk [vmem:[%s2985_s6 + $0x38] sm:$0xff] %vm1423_vm1, %v1562_v57 }
 0x1ac   : > { %v1192_v58 = vpop.f32.mrb[8].mxu1 }
 0x1ad   : > { %v1563_v11 = vadd.f32 %v1405_v14, %v1192_v58  ;;  %v1194_v59 = vpop.f32.mrb[9].mxu1 }
 0x1ae   : > { %v1564_v61 = vadd.f32 %v1407_v48, %v1194_v59  ;;  %v1196_v63 = vpop.f32.mrb[10].mxu1 }
 0x1af   : > { %1431 = vst [vmem:[%s2985_s6 + $0x40] sm:$0xff] %v1563_v11  ;;  %v1565_v0 = vadd.f32 %v1409_v38, %v1196_v63  ;;  %v1198_v1 = vpop.f32.mrb[11].mxu1 }
 0x1b0   : > { %1432 = vst.msk [vmem:[%s2985_s6 + $0x48] sm:$0xff] %vm1423_vm1, %v1564_v61  ;;  %v1566_v2 = vadd.f32 %v1411_v39, %v1198_v1 }
 0x1b1   : > { %1433 = vst [vmem:[%s2985_s6 + $0x50] sm:$0xff] %v1565_v0 }
 0x1b2   : > { %1434 = vst.msk [vmem:[%s2985_s6 + $0x58] sm:$0xff] %vm1423_vm1, %v1566_v2 }
 0x1b4   : > { %v1202_v3 = vpop.f32.mrb[12].mxu1 }
 0x1b5   : > { %v1567_v4 = vadd.f32 %v1415_v41, %v1202_v3  ;;  %v1204_v5 = vpop.f32.mrb[13].mxu1 }
 0x1b6   : > { %v1568_v6 = vadd.f32 %v1417_v42, %v1204_v5  ;;  %v1206_v7 = vpop.f32.mrb[14].mxu1 }
 0x1b7   : > { %1435 = vst [vmem:[%s2985_s6 + $0x60] sm:$0xff] %v1567_v4  ;;  %v1207_v8 = vpop.f32.mrb[15].mxu1 }
 0x1b8   : > { %1436 = vst.msk [vmem:[%s2985_s6 + $0x68] sm:$0xff] %vm1423_vm1, %v1568_v6 }
 0x1b9 PF: > { %s13_s14 = sadd.s32 1, %s1681_s14   ;;  %s3022_s12 = smov %s1677_s13 }
 0x1ba   : > { %p10_p5 = scmp.ge.s32.totalorder %s13_s14, 6   ;;  %s3023_s13 = smov %s3025_s15 }
 0x1bc   :  { %12 = sbr.rel (!%p10_p5) target bundleno = 2 (0x2), region = 65 }

</bundles_post_ra>
